<compile_context>
chip_gen: v5e
topology: v5e:2x2
jax: 0.10.0
libtpu: 0.0.40
codegen_flags: <defaults>
</compile_context>

<pallas_src>
import functools
import math

import jax
import jax.numpy as jnp
from jax.experimental import pallas as pl
from jax.experimental.pallas import tpu as pltpu


def _cdiv(a, b):
    return -(-a // b)


def _round_up(a, b):
    return _cdiv(a, b) * b


def _conv_band_kernel(x_ref, h_ref, w_ref, b_ref, o_ref, band_ref, *,
                      ks, wp, use_act):
    """One (batch, row-band) step of a stride-1 'same'-style conv.

    x_ref   : (1, Cin, PT)        flat row-band of the zero-padded input
    h_ref   : (1, 1, Cin, HALO)   flat halo = first HALO elems of the next band
    w_ref   : (ks*ks, Cout, Cin)  resident weights, tap-major (kh, kw)
    b_ref   : (Cout, 1)           resident bias
    o_ref   : (1, Cout, PT)       lane-dense flat output band (PT % 128 == 0)
    band_ref: (Cin, PT + HALO)    VMEM scratch: band + halo, contiguous
    """
    cout = o_ref.shape[1]
    pt = o_ref.shape[2]

    # Stitch band + halo once in VMEM; every tap shift below is a static slice.
    band_ref[:, :pt] = x_ref[0]
    band_ref[:, pt:] = h_ref[0, 0]

    acc = jnp.zeros((cout, pt), jnp.float32)
    for kh in range(ks):
        for kw in range(ks):
            s = kh * wp + kw                          # static flat tap shift
            tap = band_ref[:, s:s + pt]               # (Cin, PT) in-VMEM relayout
            acc = acc + jnp.dot(w_ref[kh * ks + kw], tap,
                                preferred_element_type=jnp.float32)

    acc = acc + b_ref[...]                            # bias broadcast over lanes
    if use_act:
        acc = jnp.maximum(acc, 0.0)
    o_ref[0] = acc.astype(o_ref.dtype)


def noise2noise_conv_block(x_nchw, weight_oihw, bias, *, ks, stride=1, pad=1,
                           use_act=True, compute_dtype=None):
    """Forward pass of Noise2Noise_ConvBlock (Conv2d + optional ReLU).

    x_nchw:      (N, Cin, H, W)       float32
    weight_oihw: (Cout, Cin, ks, ks)  PyTorch Conv2d layout
    bias:        (Cout,)
    returns      (N, Cout, Hout, Wout)
    """
    n, cin, h, w = x_nchw.shape
    cout = weight_oihw.shape[0]

    if stride != 1:
        # TODO(synk): stride>1 is computed on the stride-1 grid and subsampled
        # (stride^2 overcompute); correct but not tuned for strided use.
        full = noise2noise_conv_block(x_nchw, weight_oihw, bias, ks=ks,
                                      stride=1, pad=pad, use_act=use_act,
                                      compute_dtype=compute_dtype)
        return full[:, :, ::stride, ::stride]

    wp = w + 2 * pad                        # padded width == flat row pitch
    hout = h + 2 * pad - ks + 1
    wout = w + 2 * pad - ks + 1

    # ---- row-tile selection: Tr*Wp must be a multiple of 128 (lane-dense
    # output blocks).  Grow Tr from the minimal legal value under a VMEM budget
    # while keeping some grid parallelism for the megacore split.
    t0 = 128 // math.gcd(wp, 128)
    tr = _round_up(max(t0, 8, ks - 1), t0)
    hout_t0 = _round_up(hout, t0)
    budget = 6 * 1024 * 1024
    blk_bytes = lambda r: 8 * (cin + cout) * r * wp    # 2 bufs x 4 B, in + out
    while True:
        cand = tr * 2
        if cand > hout_t0 or blk_bytes(cand) > budget:
            break
        if n * _cdiv(hout, cand) < 4 and n * _cdiv(hout, tr) >= 4:
            break
        tr = cand

    hout_pad = _round_up(hout, tr)
    n_bands = hout_pad // tr
    pt = tr * wp                                        # multiple of 128
    s_max = (ks - 1) * (wp + 1)                         # largest tap shift
    halo = _round_up(max(s_max, 1), 128)

    # ---- wrapper glue (plain XLA): zero-pad, flatten rows onto the lane axis,
    # and build the tiny per-band halo slabs.  No ks^2 im2col blowup.
    xp = jnp.pad(x_nchw, ((0, 0), (0, 0), (pad, pad), (pad, pad)))
    x_flat = xp.reshape(n, cin, (h + 2 * pad) * wp)
    lflat = (n_bands + 1) * pt                          # room for the last halo
    x_flat = jnp.pad(x_flat, ((0, 0), (0, 0), (0, lflat - x_flat.shape[-1])))
    halos = (x_flat[:, :, pt:]
             .reshape(n, cin, n_bands, pt)[:, :, :, :halo]
             .transpose(0, 2, 1, 3))                    # (N, bands, Cin, HALO)

    # OIHW -> (kh, kw, Cout, Cin) -> (ks*ks, Cout, Cin); tap index t = kh*ks+kw.
    w3 = jnp.transpose(weight_oihw, (2, 3, 0, 1)).reshape(ks * ks, cout, cin)
    b2 = bias.reshape(cout, 1).astype(jnp.float32)

    if compute_dtype is not None:                       # optional bf16 streaming
        x_flat = x_flat.astype(compute_dtype)
        halos = halos.astype(compute_dtype)
        w3 = w3.astype(compute_dtype)
    band_dtype = x_flat.dtype

    kernel = functools.partial(_conv_band_kernel, ks=ks, wp=wp, use_act=use_act)

    out_flat = pl.pallas_call(
        kernel,
        out_shape=jax.ShapeDtypeStruct((n, cout, n_bands * pt), jnp.float32),
        grid_spec=pltpu.PrefetchScalarGridSpec(
            num_scalar_prefetch=0,
            grid=(n, n_bands),
            in_specs=[
                pl.BlockSpec((1, cin, pt), lambda b, j: (b, 0, j)),
                pl.BlockSpec((1, 1, cin, halo), lambda b, j: (b, j, 0, 0)),
                pl.BlockSpec((ks * ks, cout, cin), lambda b, j: (0, 0, 0)),
                pl.BlockSpec((cout, 1), lambda b, j: (0, 0)),
            ],
            out_specs=pl.BlockSpec((1, cout, pt), lambda b, j: (b, 0, j)),
            scratch_shapes=[pltpu.VMEM((cin, pt + halo), band_dtype)],
        ),
        compiler_params=pltpu.CompilerParams(
            dimension_semantics=("parallel", "parallel"),
            vmem_limit_bytes=int(min(48 * 1024 * 1024,
                                     max(32 * 1024 * 1024, 2 * blk_bytes(tr)))),
        ),
    )(x_flat, halos, w3, b2)

    # Flat (Hout_pad, Wp) row-major -> free reshape, crop padded rows and the
    # (ks-1) garbage columns.
    return out_flat.reshape(n, cout, hout_pad, wp)[:, :, :hout, :wout]


if __name__ == "__main__":
    # Module config: ni=4, no=8, ks=3, stride=1, pad=1, use_act=True
    ni, no, ks, stride, pad = 4, 8, 3, 1, 1
    N, H, W = 2, 16, 16

    key = jax.random.PRNGKey(0)
    kx, kw, kb = jax.random.split(key, 3)
    x = jax.random.normal(kx, (N, ni, H, W), dtype=jnp.float32)
    weight = 0.1 * jax.random.normal(kw, (no, ni, ks, ks), dtype=jnp.float32)
    bias = 0.1 * jax.random.normal(kb, (no,), dtype=jnp.float32)

    out = noise2noise_conv_block(x, weight, bias, ks=ks, stride=stride,
                                 pad=pad, use_act=True)
    out = jax.block_until_ready(out)

    # Pure-JAX reference (mirrors PyTorch NCHW Conv2d + ReLU).
    ref = jax.lax.conv_general_dilated(
        x, weight, window_strides=(stride, stride),
        padding=((pad, pad), (pad, pad)),
        dimension_numbers=("NCHW", "OIHW", "NCHW"),
        precision=jax.lax.Precision.HIGHEST)
    ref = jnp.maximum(ref + bias.reshape(1, no, 1, 1), 0.0)

    assert out.shape == (N, no, H, W), out.shape
    assert jnp.allclose(out, ref, atol=2e-3, rtol=2e-3), float(
        jnp.max(jnp.abs(out - ref)))
    print("KERNEL_OK")
</pallas_src>

<mosaic_0001>
module attributes {stable_mosaic.version = 11 : i64} {
  func.func @_conv_band_kernel(%arg0: i32, %arg1: i32, %arg2: memref<1x4x1152xf32, #tpu.memory_space<vmem>>, %arg3: memref<1x1x4x128xf32, #tpu.memory_space<vmem>>, %arg4: memref<9x8x4xf32, #tpu.memory_space<vmem>>, %arg5: memref<8x1xf32, #tpu.memory_space<vmem>>, %arg6: memref<1x8x1152xf32, #tpu.memory_space<vmem>>, %arg7: memref<4x1280xf32, #tpu.memory_space<vmem>>) attributes {dimension_semantics = [#tpu.dimension_semantics<parallel>, #tpu.dimension_semantics<parallel>], iteration_bounds = array<i64: 2, 1>, scalar_prefetch = 0 : i64, scratch_operands = 1 : i64, tpu.core_type = #tpu.core_type<tc>, window_params = [{transform_indices = @transform_0, window_bounds = array<i64: 1, 4, 1152>}, {transform_indices = @transform_1, window_bounds = array<i64: 1, 1, 4, 128>}, {pipeline_mode = #tpu.pipeline_mode<synchronous>, transform_indices = @transform_2, window_bounds = array<i64: 9, 8, 4>}, {pipeline_mode = #tpu.pipeline_mode<synchronous>, transform_indices = @transform_3, window_bounds = array<i64: 8, 1>}, {transform_indices = @transform_4, window_bounds = array<i64: 1, 8, 1152>}]} {
    %c0 = arith.constant 0 : index
    %c0_0 = arith.constant 0 : index
    %c0_1 = arith.constant 0 : index
    %0 = vector.load %arg2[%c0, %c0_0, %c0_1] : memref<1x4x1152xf32, #tpu.memory_space<vmem>>, vector<1x4x1152xf32>
    %1 = vector.shape_cast %0 : vector<1x4x1152xf32> to vector<4x1152xf32>
    %c0_2 = arith.constant 0 : index
    %c0_3 = arith.constant 0 : index
    %2 = vector.load %arg7[%c0_2, %c0_3] : memref<4x1280xf32, #tpu.memory_space<vmem>>, vector<4x1152xf32>
    tpu.vector_store %arg7[%c0_2, %c0_3], %1 {strides = array<i32>} : memref<4x1280xf32, #tpu.memory_space<vmem>>, vector<4x1152xf32>,
    %c0_4 = arith.constant 0 : index
    %c0_5 = arith.constant 0 : index
    %c0_6 = arith.constant 0 : index
    %c0_7 = arith.constant 0 : index
    %3 = vector.load %arg3[%c0_4, %c0_5, %c0_6, %c0_7] : memref<1x1x4x128xf32, #tpu.memory_space<vmem>>, vector<1x1x4x128xf32>
    %4 = vector.shape_cast %3 : vector<1x1x4x128xf32> to vector<4x128xf32>
    %c0_8 = arith.constant 0 : index
    %c1152 = arith.constant 1152 : index
    %5 = vector.load %arg7[%c0_8, %c1152] : memref<4x1280xf32, #tpu.memory_space<vmem>>, vector<4x128xf32>
    tpu.vector_store %arg7[%c0_8, %c1152], %4 {strides = array<i32>} : memref<4x1280xf32, #tpu.memory_space<vmem>>, vector<4x128xf32>,
    %cst = arith.constant 0.000000e+00 : f32
    %6 = vector.broadcast %cst : f32 to vector<8x1152xf32>
    %c0_9 = arith.constant 0 : index
    %c0_10 = arith.constant 0 : index
    %7 = vector.load %arg7[%c0_9, %c0_10] : memref<4x1280xf32, #tpu.memory_space<vmem>>, vector<4x1152xf32>
    %c0_11 = arith.constant 0 : index
    %c0_12 = arith.constant 0 : index
    %c0_13 = arith.constant 0 : index
    %8 = vector.load %arg4[%c0_11, %c0_12, %c0_13] : memref<9x8x4xf32, #tpu.memory_space<vmem>>, vector<1x8x4xf32>
    %9 = vector.shape_cast %8 : vector<1x8x4xf32> to vector<8x4xf32>
    %cst_14 = arith.constant dense<0.000000e+00> : vector<8x1152xf32>
    %10 = tpu.matmul %9, %7, %cst_14 {dimension_numbers = #tpu.dot_dimension_numbers<[1], [0], [0], [1], [0, 0, 1, 1], [], []>} : vector<8x4xf32>, vector<4x1152xf32>, vector<8x1152xf32> -> vector<8x1152xf32>
    %11 = arith.addf %6, %10 : vector<8x1152xf32>
    %c0_15 = arith.constant 0 : index
    %c1 = arith.constant 1 : index
    %12 = vector.load %arg7[%c0_15, %c1] : memref<4x1280xf32, #tpu.memory_space<vmem>>, vector<4x1152xf32>
    %c1_16 = arith.constant 1 : index
    %c0_17 = arith.constant 0 : index
    %c0_18 = arith.constant 0 : index
    %13 = vector.load %arg4[%c1_16, %c0_17, %c0_18] : memref<9x8x4xf32, #tpu.memory_space<vmem>>, vector<1x8x4xf32>
    %14 = vector.shape_cast %13 : vector<1x8x4xf32> to vector<8x4xf32>
    %cst_19 = arith.constant dense<0.000000e+00> : vector<8x1152xf32>
    %15 = tpu.matmul %14, %12, %cst_19 {dimension_numbers = #tpu.dot_dimension_numbers<[1], [0], [0], [1], [0, 0, 1, 1], [], []>} : vector<8x4xf32>, vector<4x1152xf32>, vector<8x1152xf32> -> vector<8x1152xf32>
    %16 = arith.addf %11, %15 : vector<8x1152xf32>
    %c0_20 = arith.constant 0 : index
    %c2 = arith.constant 2 : index
    %17 = vector.load %arg7[%c0_20, %c2] : memref<4x1280xf32, #tpu.memory_space<vmem>>, vector<4x1152xf32>
    %c2_21 = arith.constant 2 : index
    %c0_22 = arith.constant 0 : index
    %c0_23 = arith.constant 0 : index
    %18 = vector.load %arg4[%c2_21, %c0_22, %c0_23] : memref<9x8x4xf32, #tpu.memory_space<vmem>>, vector<1x8x4xf32>
    %19 = vector.shape_cast %18 : vector<1x8x4xf32> to vector<8x4xf32>
    %cst_24 = arith.constant dense<0.000000e+00> : vector<8x1152xf32>
    %20 = tpu.matmul %19, %17, %cst_24 {dimension_numbers = #tpu.dot_dimension_numbers<[1], [0], [0], [1], [0, 0, 1, 1], [], []>} : vector<8x4xf32>, vector<4x1152xf32>, vector<8x1152xf32> -> vector<8x1152xf32>
    %21 = arith.addf %16, %20 : vector<8x1152xf32>
    %c0_25 = arith.constant 0 : index
    %c18 = arith.constant 18 : index
    %22 = vector.load %arg7[%c0_25, %c18] : memref<4x1280xf32, #tpu.memory_space<vmem>>, vector<4x1152xf32>
    %c3 = arith.constant 3 : index
    %c0_26 = arith.constant 0 : index
    %c0_27 = arith.constant 0 : index
    %23 = vector.load %arg4[%c3, %c0_26, %c0_27] : memref<9x8x4xf32, #tpu.memory_space<vmem>>, vector<1x8x4xf32>
    %24 = vector.shape_cast %23 : vector<1x8x4xf32> to vector<8x4xf32>
    %cst_28 = arith.constant dense<0.000000e+00> : vector<8x1152xf32>
    %25 = tpu.matmul %24, %22, %cst_28 {dimension_numbers = #tpu.dot_dimension_numbers<[1], [0], [0], [1], [0, 0, 1, 1], [], []>} : vector<8x4xf32>, vector<4x1152xf32>, vector<8x1152xf32> -> vector<8x1152xf32>
    %26 = arith.addf %21, %25 : vector<8x1152xf32>
    %c0_29 = arith.constant 0 : index
    %c19 = arith.constant 19 : index
    %27 = vector.load %arg7[%c0_29, %c19] : memref<4x1280xf32, #tpu.memory_space<vmem>>, vector<4x1152xf32>
    %c4 = arith.constant 4 : index
    %c0_30 = arith.constant 0 : index
    %c0_31 = arith.constant 0 : index
    %28 = vector.load %arg4[%c4, %c0_30, %c0_31] : memref<9x8x4xf32, #tpu.memory_space<vmem>>, vector<1x8x4xf32>
    %29 = vector.shape_cast %28 : vector<1x8x4xf32> to vector<8x4xf32>
    %cst_32 = arith.constant dense<0.000000e+00> : vector<8x1152xf32>
    %30 = tpu.matmul %29, %27, %cst_32 {dimension_numbers = #tpu.dot_dimension_numbers<[1], [0], [0], [1], [0, 0, 1, 1], [], []>} : vector<8x4xf32>, vector<4x1152xf32>, vector<8x1152xf32> -> vector<8x1152xf32>
    %31 = arith.addf %26, %30 : vector<8x1152xf32>
    %c0_33 = arith.constant 0 : index
    %c20 = arith.constant 20 : index
    %32 = vector.load %arg7[%c0_33, %c20] : memref<4x1280xf32, #tpu.memory_space<vmem>>, vector<4x1152xf32>
    %c5 = arith.constant 5 : index
    %c0_34 = arith.constant 0 : index
    %c0_35 = arith.constant 0 : index
    %33 = vector.load %arg4[%c5, %c0_34, %c0_35] : memref<9x8x4xf32, #tpu.memory_space<vmem>>, vector<1x8x4xf32>
    %34 = vector.shape_cast %33 : vector<1x8x4xf32> to vector<8x4xf32>
    %cst_36 = arith.constant dense<0.000000e+00> : vector<8x1152xf32>
    %35 = tpu.matmul %34, %32, %cst_36 {dimension_numbers = #tpu.dot_dimension_numbers<[1], [0], [0], [1], [0, 0, 1, 1], [], []>} : vector<8x4xf32>, vector<4x1152xf32>, vector<8x1152xf32> -> vector<8x1152xf32>
    %36 = arith.addf %31, %35 : vector<8x1152xf32>
    %c0_37 = arith.constant 0 : index
    %c36 = arith.constant 36 : index
    %37 = vector.load %arg7[%c0_37, %c36] : memref<4x1280xf32, #tpu.memory_space<vmem>>, vector<4x1152xf32>
    %c6 = arith.constant 6 : index
    %c0_38 = arith.constant 0 : index
    %c0_39 = arith.constant 0 : index
    %38 = vector.load %arg4[%c6, %c0_38, %c0_39] : memref<9x8x4xf32, #tpu.memory_space<vmem>>, vector<1x8x4xf32>
    %39 = vector.shape_cast %38 : vector<1x8x4xf32> to vector<8x4xf32>
    %cst_40 = arith.constant dense<0.000000e+00> : vector<8x1152xf32>
    %40 = tpu.matmul %39, %37, %cst_40 {dimension_numbers = #tpu.dot_dimension_numbers<[1], [0], [0], [1], [0, 0, 1, 1], [], []>} : vector<8x4xf32>, vector<4x1152xf32>, vector<8x1152xf32> -> vector<8x1152xf32>
    %41 = arith.addf %36, %40 : vector<8x1152xf32>
    %c0_41 = arith.constant 0 : index
    %c37 = arith.constant 37 : index
    %42 = vector.load %arg7[%c0_41, %c37] : memref<4x1280xf32, #tpu.memory_space<vmem>>, vector<4x1152xf32>
    %c7 = arith.constant 7 : index
    %c0_42 = arith.constant 0 : index
    %c0_43 = arith.constant 0 : index
    %43 = vector.load %arg4[%c7, %c0_42, %c0_43] : memref<9x8x4xf32, #tpu.memory_space<vmem>>, vector<1x8x4xf32>
    %44 = vector.shape_cast %43 : vector<1x8x4xf32> to vector<8x4xf32>
    %cst_44 = arith.constant dense<0.000000e+00> : vector<8x1152xf32>
    %45 = tpu.matmul %44, %42, %cst_44 {dimension_numbers = #tpu.dot_dimension_numbers<[1], [0], [0], [1], [0, 0, 1, 1], [], []>} : vector<8x4xf32>, vector<4x1152xf32>, vector<8x1152xf32> -> vector<8x1152xf32>
    %46 = arith.addf %41, %45 : vector<8x1152xf32>
    %c0_45 = arith.constant 0 : index
    %c38 = arith.constant 38 : index
    %47 = vector.load %arg7[%c0_45, %c38] : memref<4x1280xf32, #tpu.memory_space<vmem>>, vector<4x1152xf32>
    %c8 = arith.constant 8 : index
    %c0_46 = arith.constant 0 : index
    %c0_47 = arith.constant 0 : index
    %48 = vector.load %arg4[%c8, %c0_46, %c0_47] : memref<9x8x4xf32, #tpu.memory_space<vmem>>, vector<1x8x4xf32>
    %49 = vector.shape_cast %48 : vector<1x8x4xf32> to vector<8x4xf32>
    %cst_48 = arith.constant dense<0.000000e+00> : vector<8x1152xf32>
    %50 = tpu.matmul %49, %47, %cst_48 {dimension_numbers = #tpu.dot_dimension_numbers<[1], [0], [0], [1], [0, 0, 1, 1], [], []>} : vector<8x4xf32>, vector<4x1152xf32>, vector<8x1152xf32> -> vector<8x1152xf32>
    %51 = arith.addf %46, %50 : vector<8x1152xf32>
    %c0_49 = arith.constant 0 : index
    %c0_50 = arith.constant 0 : index
    %52 = vector.load %arg5[%c0_49, %c0_50] : memref<8x1xf32, #tpu.memory_space<vmem>>, vector<8x1xf32>
    %53 = vector.broadcast %52 : vector<8x1xf32> to vector<8x1152xf32>
    %54 = arith.addf %51, %53 : vector<8x1152xf32>
    %cst_51 = arith.constant 0.000000e+00 : f32
    %55 = vector.broadcast %cst_51 : f32 to vector<8x1152xf32>
    %56 = arith.maximumf %54, %55 : vector<8x1152xf32>
    %c0_52 = arith.constant 0 : index
    %c0_53 = arith.constant 0 : index
    %c0_54 = arith.constant 0 : index
    %57 = vector.load %arg6[%c0_52, %c0_53, %c0_54] : memref<1x8x1152xf32, #tpu.memory_space<vmem>>, vector<1x8x1152xf32>
    %58 = vector.shape_cast %57 : vector<1x8x1152xf32> to vector<8x1152xf32>
    %59 = vector.shape_cast %56 : vector<8x1152xf32> to vector<1x8x1152xf32>
    tpu.vector_store %arg6[%c0_52, %c0_53, %c0_54], %59 {strides = array<i32>} : memref<1x8x1152xf32, #tpu.memory_space<vmem>>, vector<1x8x1152xf32>,
    return
  }
  func.func @transform_0(%arg0: i32, %arg1: i32) -> (i32, i32, i32) {
    %c0_i32 = arith.constant 0 : i32
    %c0_i32_0 = arith.constant 0 : i32
    return %arg0, %c0_i32, %arg1 : i32, i32, i32
  }
  func.func @transform_1(%arg0: i32, %arg1: i32) -> (i32, i32, i32, i32) {
    %c0_i32 = arith.constant 0 : i32
    %c0_i32_0 = arith.constant 0 : i32
    %c0_i32_1 = arith.constant 0 : i32
    return %arg0, %arg1, %c0_i32, %c0_i32_0 : i32, i32, i32, i32
  }
  func.func @transform_2(%arg0: i32, %arg1: i32) -> (i32, i32, i32) {
    %c0_i32 = arith.constant 0 : i32
    %c0_i32_0 = arith.constant 0 : i32
    %c0_i32_1 = arith.constant 0 : i32
    %c0_i32_2 = arith.constant 0 : i32
    return %c0_i32, %c0_i32_0, %c0_i32_1 : i32, i32, i32
  }
  func.func @transform_3(%arg0: i32, %arg1: i32) -> (i32, i32) {
    %c0_i32 = arith.constant 0 : i32
    %c0_i32_0 = arith.constant 0 : i32
    %c0_i32_1 = arith.constant 0 : i32
    return %c0_i32, %c0_i32_0 : i32, i32
  }
  func.func @transform_4(%arg0: i32, %arg1: i32) -> (i32, i32, i32) {
    %c0_i32 = arith.constant 0 : i32
    %c0_i32_0 = arith.constant 0 : i32
    return %arg0, %c0_i32, %arg1 : i32, i32, i32
  }
}

</mosaic_0001>

<bundles_post_ra>
// kernel: tpu_custom_call.1
= control target key start
LH: loop header
LB: loop body
LE: loop exit
PB: predicated region body
PF: predicated region fallthrough
CT: control target
= control target key end

     0   :  { %9 = vsyncpa [#allocation4], 0  ;;  %s3900_s0 = inlined_call_operand.hbm [shape: f32[2,4,2304], index: 0, kind: input, shape index: {}]   ;;  %s3901_s1 = inlined_call_operand.vmem [shape: f32[2,1,4,128], index: 1, kind: input, shape index: {}]   ;;  %s3902_s2 = inlined_call_operand.vmem [shape: f32[9,8,4], index: 2, kind: input, shape index: {}]   ;;  %s3903_s3 = inlined_call_operand.vmem [shape: f32[8,1], index: 3, kind: input, shape index: {}]   ;;  %s3904_s4 = inlined_call_operand.hbm [shape: f32[2,8,1152], index: 4, kind: output, shape index: {}]  }
   0x1   :  { %11 = vsyncpa [#allocation4 + $0x1], 0 }
   0x2   :  { %12 = vsyncpa [#allocation5], 0 }
   0x3   :  { %14 = vsyncpa [#allocation5 + $0x1], 0  ;;  %s3215_s15 = smov 0   ;;  %s3217_s16 = smov 0  }
   0x4   :  { %s3219_s17 = smov 0   ;;  %s3221_s18 = smov 0  }
   0x5   :  { %s3223_s19 = smov 0   ;;  %s3225_s20 = smov 0  }
   0x6 LB: > { %s2809_s21 = sadd.s32 4294967295, %s3179_s20   ;;  %s2810_s22 = sadd.s32 4294967294, %s3179_s20   ;;  %s3179_s20 = sphi %s3225_s20, %s20_s20   ;;  %s3175_s19 = sphi %s3223_s19, %s3913_s19   ;;  %s3171_s18 = sphi %s3221_s18, %s3912_s18   ;;  %s3167_s17 = sphi %s3219_s17, %s3911_s17   ;;  %s3163_s16 = sphi %s3217_s16, %s3910_s16   ;;  %s3159_s15 = sphi %s3215_s15, %s3909_s15  }
   0x7   : > { %s32_s23 = sadd.s32 1, %s3175_s19  ;;  %s41_s24 = sadd.s32 1, %s3167_s17 }
   0x8   : > { %p34_p0 = scmp.ge.s32.totalorder %s32_s23, 2  ;;  %p48_p1 = scmp.ne.s32.totalorder %s3167_s17, %s3163_s16 }
   0x9   : > { %p49_p2 = scmp.eq.s32.totalorder %s3179_s20, 0  ;;  %p54_p3 = scmp.ne.s32.totalorder %s3163_s16, %s3159_s15 }
   0xa   : > { %s3915_s23 = smov (%p34_p0, %s32_s23), 0  ;;  %p55_p5 = scmp.eq.s32.totalorder %s2809_s21, 0 }
   0xb   : > { %p3256_p4 = por %p49_p2, %p48_p1  ;;  %s36_s26 = ssub.s32 %s3175_s19, %s3915_s23 }
   0xc   : > { %p150_p6 = scmp.eq.s32.totalorder %s2809_s21, 1  ;;  %p39_p7 = scmp.eq.s32.totalorder %s36_s26, 0 }
   0xd   : > { %p3262_p8 = por %p55_p5, %p54_p3  ;;  %p156_p10 = scmp.eq.s32.totalorder %s2810_s22, 1 }
   0xe   : > { %p3266_p9 = por %p150_p6, %p48_p1  ;;  %p2812_p12 = scmp.ge.s32.totalorder %s3179_s20, 2 }
   0xf   : > { %s3271_s29 = scalar_select %p39_p7, %s3167_s17, %s41_s24  }
  0x10   : > { %p3273_p11 = por %p156_p10, %p54_p3  ;;  %p3006_p13 = scmp.lt.s32.totalorder %s3179_s20, 2 }
  0x11   : > { %s182_s5 = sand.u32 1, %s3167_s17   ;;  %s2990_s7 = smul.u32 72, %s3175_s19 }
  0x12   : > { %s2989_s6 = smul.u32 36, %s182_s5  ;;  %p2999_p0 = pnand %p3006_p13, %p3256_p4 }
  0x13   : > { %p2814_p2 = scmp.ge.s32.totalorder %s3179_s20, 1  ;;  %s193_s10 = scalar_lea.hbm %s3900_s0, %s2990_s7 }
  0x14   : > { %s186_s11 = scalar_lea.vmem [#allocation3], %s2989_s6  ;;  %s195_s13 = sshll.u32 %s193_s10, 4  ;;  %s196_s13 = int_to_ptr.hbm [resolvable:$true] %s195_s13 }
  0x15   : > { %s197_s12 = sshll.u32 %s186_s11, 4  ;;  %s183_s14 = scalar_lea.sflag [#allocation4], %s182_s5  ;;  %s198_s12 = int_to_ptr.vmem [resolvable:$true] %s197_s12 }
  0x16   : > { %3001 = dma.hbm_to_vmem [thread:$0]  (!%p2999_p0), %s196_s13, 576, %s198_s12, %s183_s14  }
  0x17   : > { %p212_p1 = scmp.lt.s32.totalorder %s3179_s20, 3 }
  0x19   : > { %p213_p3 = pnand %p2814_p2, %p212_p1 }
  0x1a   : > { %s3289_s21 = sand.u32 (!%p213_p3), 1, %s3163_s16  }
  0x1b   : > { %216 = sbr.rel (%p213_p3) target bundleno = 511 (0x1ff), region = 36  ;;  %s219_s24 = scalar_lea.sflag (!%p213_p3), [#allocation4], %s3289_s21 }
  0x1c   : > { %s2991_s22 = smul.u32 (!%p213_p3), 36, %s3289_s21 }
  0x1e   : > { %s222_s25 = scalar_lea.vmem (!%p213_p3), [#allocation3], %s2991_s22 }
  0x20   : > { %3150 = dma.done.wait (%p3262_p8), %s219_s24, 576  }
  0x21   : > { %3152 = vsyncadd (%p3262_p8), %s219_s24, 4294966720  ;;  %v3297_v0 = vld [vmem:[%s222_s25 + $0x10] sm:$0xff]  ;;  %v3299_v1 = vld [vmem:[%s222_s25 + $0x8] sm:$0xff]  ;;  %p256_p4 = scmp.lt.s32.totalorder %s3171_s18, 1  ;;  %s3181_s27 = smov 127   ;;  %vm332_vm0 = vcmask 1039360  }
  0x22   : > { %298 = vst [vmem:[#allocation1 + $0x20] ss:$2 sm:$0xff] %v3297_v0  ;;  %v3303_v2 = vld [vmem:[%s222_s25] sm:$0xff]  ;;  %v3306_v3 = vld [vmem:[%s222_s25 + $0x18] sm:$0xff]  ;;  %s3182_s9 = smov 126   ;;  %s3183_s10 = smov 110  }
  0x23   : > { %296 = vst [vmem:[#allocation1 + $0x10] ss:$2 sm:$0xff] %v3299_v1  ;;  %s257_s26 = scalar_select %p256_p4, %s3171_s18, 1  ;;  %v268_v6 = vld [vmem:[%s222_s25 + $0x20] sm:$0xf]  ;;  %vm346_vm1 = vcmask 1043456  }
  0x24   : > { %294 = vst [vmem:[#allocation1] ss:$2 sm:$0xff] %v3303_v2  ;;  %s3184_s11 = smov 109   ;;  %s3185_s12 = smov 108   ;;  %vm342_vm2 = vcmask 31744   ;;  %vm818_vm3 = vcmask 1031168  }
  0x25   : > { %300 = vst [vmem:[#allocation1 + $0x30] ss:$2 sm:$0xff] %v3306_v3  ;;  %s2815_s5 = sshll.u32 %s257_s26, 2  ;;  %s3186_s22 = smov 92   ;;  %vm1088_vm4 = vcmask 900096   ;;  %vm1358_vm5 = vcmask 891904  }
  0x26   : > { %s262_s8 = scalar_lea.vmem %s3901_s1, %s2815_s5  ;;  %273 = vst [vmem:[#allocation2 + $0x20] sm:$0xf] %v268_v6  ;;  %s3187_s5 = smov 91   ;;  %vm1628_vm6 = vcmask 883712   ;;  %vm1898_vm7 = vcmask 752640   ;;  %vm2168_vm8 = vcmask 744448  }
  0x27   : > { %v274_v12 = vld [vmem:[%s262_s8] sm:$0xf]  ;;  %s3188_s6 = smov 90   ;;  %vm2438_vm9 = vcmask 736256   ;;  %s2993_s8 = smul.u32 72, %s3171_s18 }
  0x28   : > { %275 = vst [vmem:[#allocation2 + $0x24] sm:$0xf] %v274_v12  ;;  %s2692_s13 = scalar_lea.sflag [#allocation5], %s3289_s21  ;;  %s3117_s26 = scalar_lea.hbm %s3904_s4, 144 }
  0x29   : > { %v305_v4 = vld.sshfl [vmem:[#allocation1 + $0x20] sm:$0xff pattern:$0x75316420]  ;;  %v306_v5 = vld.sshfl [vmem:[#allocation1 + $0x28] sm:$0xff pattern:$0x75316420] }
  0x2a   : > { %320 = vrot.lane.b32.xlu2 %v305_v4, %s3181_s27  ;;  %554 = vst [vmem:[#allocation1 + $0x20] ss:$2 sm:$0xff] %v3297_v0  ;;  %v303_v7 = vld.sshfl [vmem:[#allocation1 + $0x10] sm:$0xff pattern:$0x75316420] }
  0x2b   : > { %v304_v8 = vld.sshfl [vmem:[#allocation1 + $0x18] sm:$0xff pattern:$0x75316420]  ;;  %316 = vrot.lane.b32.xlu1 %v303_v7, %s3181_s27  ;;  %v301_v9 = vld.sshfl [vmem:[#allocation1] sm:$0xff pattern:$0x75316420] }
  0x2c   : > { %552 = vst [vmem:[#allocation1 + $0x10] ss:$2 sm:$0xff] %v3299_v1  ;;  %312 = vrot.lane.b32.xlu0 %v301_v9, %s3181_s27  ;;  %v308_v10 = vld.sshfl [vmem:[#allocation1 + $0x38] sm:$0xff pattern:$0x75316420] }
  0x2d   : > { %v307_v11 = vld.sshfl [vmem:[#allocation1 + $0x30] sm:$0xff pattern:$0x75316420]  ;;  %v302_v15 = vld.sshfl [vmem:[#allocation1 + $0x8] sm:$0xff pattern:$0x75316420] }
  0x2e   : > { %556 = vst [vmem:[#allocation1 + $0x30] ss:$2 sm:$0xff] %v3306_v3  ;;  %v280_v35 = vld [vmem:[#allocation2 + $0x20] sm:$0xf] }
  0x2f   : > { %v3340_v24 = vld [vmem:[#allocation2 + $0x20] sm:$0xff] }
  0x30   : > { %309 = vst [vmem:[#allocation1] ss:$2 sm:$0xff] %v3340_v24 }
  0x31   : > { %v3320_v13 = vld.sshfl [vmem:[#allocation1 + $0x20] sm:$0xff pattern:$0x75316420]  ;;  %v3322_v14 = vld.sshfl [vmem:[#allocation1 + $0x28] sm:$0xff pattern:$0x75316420] }
  0x32   : > { %322 = vrot.lane.b32.xlu2 %v306_v5, %s3181_s27  ;;  %784 = vst [vmem:[#allocation1 + $0x20] ss:$2 sm:$0xff] %v3297_v0 }
  0x33   : > { %v3326_v16 = vld.sshfl [vmem:[#allocation1 + $0x10] sm:$0xff pattern:$0x75316420]  ;;  %v3328_v17 = vld.sshfl [vmem:[#allocation1 + $0x18] sm:$0xff pattern:$0x75316420]  ;;  %318 = vrot.lane.b32.xlu1 %v304_v8, %s3181_s27 }
  0x34   : > { %782 = vst [vmem:[#allocation1 + $0x10] ss:$2 sm:$0xff] %v3299_v1  ;;  %314 = vrot.lane.b32.xlu0 %v302_v15, %s3181_s27 }
  0x35   : > { %v3333_v18 = vld.sshfl [vmem:[#allocation1 + $0x30] sm:$0xff pattern:$0x75316420]  ;;  %v3335_v19 = vld.sshfl [vmem:[#allocation1 + $0x38] sm:$0xff pattern:$0x75316420] }
  0x36   : > { %786 = vst [vmem:[#allocation1 + $0x30] ss:$2 sm:$0xff] %v3306_v3 }
  0x37   : > { %v310_v30 = vld.sshfl [vmem:[#allocation1] sm:$0xff pattern:$0x75316420]  ;;  %v311_v31 = vld.sshfl [vmem:[#allocation1 + $0x8] sm:$0xff pattern:$0x75316420] }
  0x38   : > { %550 = vst [vmem:[#allocation1] ss:$2 sm:$0xff] %v3303_v2 }
  0x39   : > { %v791_v20 = vld.sshfl [vmem:[#allocation1 + $0x20] sm:$0xff pattern:$0x75316420]  ;;  %v792_v21 = vld.sshfl [vmem:[#allocation1 + $0x28] sm:$0xff pattern:$0x75316420] }
  0x3a   : > { %1054 = vst [vmem:[#allocation1 + $0x20] ss:$2 sm:$0xff] %v3297_v0  ;;  %328 = vrot.lane.b32.xlu2 %v310_v30, %s3181_s27 }
  0x3b   : > { %v790_v22 = vld.sshfl [vmem:[#allocation1 + $0x18] sm:$0xff pattern:$0x75316420]  ;;  %v789_v23 = vld.sshfl [vmem:[#allocation1 + $0x10] sm:$0xff pattern:$0x75316420]  ;;  %326 = vrot.lane.b32.xlu1 %v308_v10, %s3181_s27 }
  0x3c   : > { %1052 = vst [vmem:[#allocation1 + $0x10] ss:$2 sm:$0xff] %v3299_v1  ;;  %324 = vrot.lane.b32.xlu0 %v307_v11, %s3181_s27 }
  0x3d   : > { %v793_v25 = vld.sshfl [vmem:[#allocation1 + $0x30] sm:$0xff pattern:$0x75316420]  ;;  %v794_v26 = vld.sshfl [vmem:[#allocation1 + $0x38] sm:$0xff pattern:$0x75316420] }
  0x3e   : > { %1056 = vst [vmem:[#allocation1 + $0x30] ss:$2 sm:$0xff] %v3306_v3 }
  0x3f   : > { %v3354_v36 = vld.sshfl [vmem:[#allocation1] sm:$0xff pattern:$0x75316420]  ;;  %v3356_v37 = vld.sshfl [vmem:[#allocation1 + $0x8] sm:$0xff pattern:$0x75316420] }
  0x40   : > { %565 = vst [vmem:[#allocation1] ss:$2 sm:$0xff] %v280_v35 }
  0x41   : > { %v1062_v27 = vld.sshfl [vmem:[#allocation1 + $0x28] sm:$0xff pattern:$0x75316420]  ;;  %v1061_v28 = vld.sshfl [vmem:[#allocation1 + $0x20] sm:$0xff pattern:$0x75316420] }
  0x42   : > { %1324 = vst [vmem:[#allocation1 + $0x20] ss:$2 sm:$0xff] %v3297_v0  ;;  %806 = vrot.lane.b32.xlu2 %v791_v20, %s3182_s9 }
  0x43   : > { %v1059_v29 = vld.sshfl [vmem:[#allocation1 + $0x10] sm:$0xff pattern:$0x75316420]  ;;  %804 = vrot.lane.b32.xlu1 %v790_v22, %s3182_s9  ;;  %v1060_v32 = vld.sshfl [vmem:[#allocation1 + $0x18] sm:$0xff pattern:$0x75316420] }
  0x44   : > { %330 = vrot.lane.b32.xlu0 %v311_v31, %s3181_s27  ;;  %1322 = vst [vmem:[#allocation1 + $0x10] ss:$2 sm:$0xff] %v3299_v1 }
  0x45   : > { %v1063_v33 = vld.sshfl [vmem:[#allocation1 + $0x30] sm:$0xff pattern:$0x75316420]  ;;  %v1064_v34 = vld.sshfl [vmem:[#allocation1 + $0x38] sm:$0xff pattern:$0x75316420] }
  0x46   : > { %1326 = vst [vmem:[#allocation1 + $0x30] ss:$2 sm:$0xff] %v3306_v3 }
  0x47   : > { %v3361_v38 = vld.sshfl [vmem:[#allocation1] sm:$0xff pattern:$0x75316420] }
  0x48   : > { %780 = vst [vmem:[#allocation1] ss:$2 sm:$0xff] %v3303_v2 }
  0x49   : > { %v1331_v46 = vld.sshfl [vmem:[#allocation1 + $0x20] sm:$0xff pattern:$0x75316420]  ;;  %v1332_v50 = vld.sshfl [vmem:[#allocation1 + $0x28] sm:$0xff pattern:$0x75316420] }
  0x4a   : > { %812 = vrot.lane.b32.xlu2 %v794_v26, %s3182_s9  ;;  %1594 = vst [vmem:[#allocation1 + $0x20] ss:$2 sm:$0xff] %v3297_v0 }
  0x4b   : > { %810 = vrot.lane.b32.xlu1 %v793_v25, %s3182_s9  ;;  %v1329_v39 = vld.sshfl [vmem:[#allocation1 + $0x10] sm:$0xff pattern:$0x75316420]  ;;  %v1330_v40 = vld.sshfl [vmem:[#allocation1 + $0x18] sm:$0xff pattern:$0x75316420] }
  0x4c   : > { %802 = vrot.lane.b32.xlu0 %v789_v23, %s3182_s9  ;;  %1592 = vst [vmem:[#allocation1 + $0x10] ss:$2 sm:$0xff] %v3299_v1 }
  0x4d   : > { %v1334_v45 = vld.sshfl [vmem:[#allocation1 + $0x38] sm:$0xff pattern:$0x75316420]  ;;  %v1333_v49 = vld.sshfl [vmem:[#allocation1 + $0x30] sm:$0xff pattern:$0x75316420] }
  0x4e   : > { %1596 = vst [vmem:[#allocation1 + $0x30] ss:$2 sm:$0xff] %v3306_v3 }
  0x4f   : > { %v788_v41 = vld.sshfl [vmem:[#allocation1 + $0x8] sm:$0xff pattern:$0x75316420]  ;;  %v787_v42 = vld.sshfl [vmem:[#allocation1] sm:$0xff pattern:$0x75316420] }
  0x50   : > { %795 = vst [vmem:[#allocation1] ss:$2 sm:$0xff] %v3340_v24 }
  0x51   : > { %v1602_v5 = vld.sshfl [vmem:[#allocation1 + $0x28] sm:$0xff pattern:$0x75316420]  ;;  %v1601_v6 = vld.sshfl [vmem:[#allocation1 + $0x20] sm:$0xff pattern:$0x75316420] }
  0x52   : > { %1074 = vrot.lane.b32.xlu2 %v1060_v32, %s3183_s10  ;;  %1864 = vst [vmem:[#allocation1 + $0x20] ss:$2 sm:$0xff] %v3297_v0 }
  0x53   : > { %1072 = vrot.lane.b32.xlu1 %v1059_v29, %s3183_s10  ;;  %v1600_v60 = vld.sshfl [vmem:[#allocation1 + $0x18] sm:$0xff pattern:$0x75316420]  ;;  %v1599_v61 = vld.sshfl [vmem:[#allocation1 + $0x10] sm:$0xff pattern:$0x75316420] }
  0x54   : > { %808 = vrot.lane.b32.xlu0 %v792_v21, %s3182_s9  ;;  %1862 = vst [vmem:[#allocation1 + $0x10] ss:$2 sm:$0xff] %v3299_v1 }
  0x55   : > { %v1604_v9 = vld.sshfl [vmem:[#allocation1 + $0x38] sm:$0xff pattern:$0x75316420]  ;;  %v1603_v11 = vld.sshfl [vmem:[#allocation1 + $0x30] sm:$0xff pattern:$0x75316420] }
  0x56   : > { %1866 = vst [vmem:[#allocation1 + $0x30] ss:$2 sm:$0xff] %v3306_v3 }
  0x57   : > { %v797_v43 = vld.sshfl [vmem:[#allocation1 + $0x8] sm:$0xff pattern:$0x75316420]  ;;  %v796_v44 = vld.sshfl [vmem:[#allocation1] sm:$0xff pattern:$0x75316420] }
  0x58   : > { %1050 = vst [vmem:[#allocation1] ss:$2 sm:$0xff] %v3303_v2 }
  0x59   : > { %v3410_v12 = vld.sshfl [vmem:[#allocation1 + $0x20] sm:$0xff pattern:$0x75316420]  ;;  %v3412_v15 = vld.sshfl [vmem:[#allocation1 + $0x28] sm:$0xff pattern:$0x75316420] }
  0x5a   : > { %1080 = vrot.lane.b32.xlu2 %v1063_v33, %s3183_s10  ;;  %2134 = vst [vmem:[#allocation1 + $0x20] ss:$2 sm:$0xff] %v3297_v0 }
  0x5b   : > { %1078 = vrot.lane.b32.xlu1 %v1062_v27, %s3183_s10  ;;  %v1869_v32 = vld.sshfl [vmem:[#allocation1 + $0x10] sm:$0xff pattern:$0x75316420]  ;;  %v1870_v35 = vld.sshfl [vmem:[#allocation1 + $0x18] sm:$0xff pattern:$0x75316420] }
  0x5c   : > { %1076 = vrot.lane.b32.xlu0 %v1061_v28, %s3183_s10  ;;  %v2816_v28 = vld [vmem:[%s3902_s2 + $0x8] sm:$0xff]  ;;  %2132 = vst [vmem:[#allocation1 + $0x10] ss:$2 sm:$0xff] %v3299_v1 }
  0x5f   : > { %v1058_v47 = vld.sshfl [vmem:[#allocation1 + $0x8] sm:$0xff pattern:$0x75316420]  ;;  %v1057_v48 = vld.sshfl [vmem:[#allocation1] sm:$0xff pattern:$0x75316420] }
  0x60   : > { %1065 = vst [vmem:[#allocation1] ss:$2 sm:$0xff] %v3340_v24 }
  0x62   : > { %800 = vrot.lane.b32.xlu2 %v788_v41, %s3182_s9 }
  0x63   : > { %798 = vrot.lane.b32.xlu1 %v787_v42, %s3182_s9 }
  0x64   : > { %1082 = vrot.lane.b32.xlu0 %v1064_v34, %s3183_s10 }
  0x67   : > { %v1066_v51 = vld.sshfl [vmem:[#allocation1] sm:$0xff pattern:$0x75316420]  ;;  %v1067_v52 = vld.sshfl [vmem:[#allocation1 + $0x8] sm:$0xff pattern:$0x75316420] }
  0x68   : > { %1320 = vst [vmem:[#allocation1] ss:$2 sm:$0xff] %v3303_v2 }
  0x6a   : > { %1342 = vrot.lane.b32.xlu2 %v1329_v39, %s3184_s11 }
  0x6b   : > { %816 = vrot.lane.b32.xlu1 %v797_v43, %s3182_s9 }
  0x6c   : > { %814 = vrot.lane.b32.xlu0 %v796_v44, %s3182_s9 }
  0x6f   : > { %v1328_v53 = vld.sshfl [vmem:[#allocation1 + $0x8] sm:$0xff pattern:$0x75316420]  ;;  %v1327_v54 = vld.sshfl [vmem:[#allocation1] sm:$0xff pattern:$0x75316420] }
  0x70   : > { %1335 = vst [vmem:[#allocation1] ss:$2 sm:$0xff] %v3340_v24 }
  0x72   : > { %1068 = vrot.lane.b32.xlu2 %v1057_v48, %s3183_s10 }
  0x73   : > { %1346 = vrot.lane.b32.xlu1 %v1331_v46, %s3184_s11  ;;  %v1873_v46 = vld.sshfl [vmem:[#allocation1 + $0x30] sm:$0xff pattern:$0x75316420] }
  0x74   : > { %1070 = vrot.lane.b32.xlu0 %v1058_v47, %s3183_s10 }
  0x77   : > { %v1336_v55 = vld.sshfl [vmem:[#allocation1] sm:$0xff pattern:$0x75316420]  ;;  %v1337_v56 = vld.sshfl [vmem:[#allocation1 + $0x8] sm:$0xff pattern:$0x75316420] }
  0x78   : > { %1590 = vst [vmem:[#allocation1] ss:$2 sm:$0xff] %v3303_v2 }
  0x7a   : > { %1086 = vrot.lane.b32.xlu2 %v1067_v52, %s3183_s10 }
  0x7b   : > { %1084 = vrot.lane.b32.xlu1 %v1066_v51, %s3183_s10 }
  0x7c   : > { %1344 = vrot.lane.b32.xlu0 %v1330_v40, %s3184_s11 }
  0x7f   : > { %v1598_v58 = vld.sshfl [vmem:[#allocation1 + $0x8] sm:$0xff pattern:$0x75316420]  ;;  %v1597_v59 = vld.sshfl [vmem:[#allocation1] sm:$0xff pattern:$0x75316420] }
  0x80   : > { %1605 = vst [vmem:[#allocation1] ss:$2 sm:$0xff] %v3340_v24 }
  0x82   : > { %1348 = vrot.lane.b32.xlu2 %v1332_v50, %s3184_s11 }
  0x83   : > { %1340 = vrot.lane.b32.xlu1 %v1328_v53, %s3184_s11 }
  0x84   : > { %1338 = vrot.lane.b32.xlu0 %v1327_v54, %s3184_s11  ;;  %v321_v57 = vpop.permute.xlu2 %320  ;;  %v2139_v54 = vld.sshfl [vmem:[#allocation1 + $0x10] sm:$0xff pattern:$0x75316420] }
  0x87   : > { %v3399_v62 = vld.sshfl [vmem:[#allocation1 + $0x8] sm:$0xff pattern:$0x75316420]  ;;  %v1606_v63 = vld.sshfl [vmem:[#allocation1] sm:$0xff pattern:$0x75316420] }
  0x88   : > { %1860 = vst [vmem:[#allocation1] ss:$2 sm:$0xff] %v3303_v2 }
  0x8a   : > { %1354 = vrot.lane.b32.xlu2 %v1336_v55, %s3184_s11 }
  0x8b   : > { %1352 = vrot.lane.b32.xlu1 %v1334_v45, %s3184_s11  ;;  %v1874_v45 = vld.sshfl [vmem:[#allocation1 + $0x38] sm:$0xff pattern:$0x75316420] }
  0x8c   : > { %1350 = vrot.lane.b32.xlu0 %v1333_v49, %s3184_s11  ;;  %v323_v4 = vpop.permute.xlu2 %322  ;;  %2136 = vst [vmem:[#allocation1 + $0x30] ss:$2 sm:$0xff] %v3306_v3 }
  0x8d   : > { %v337_v31 = vsel %vm332_vm0, %v321_v57, %v323_v4 }
  0x8f   : > { %v1867_v20 = vld.sshfl [vmem:[#allocation1] sm:$0xff pattern:$0x75316420]  ;;  %v1868_v21 = vld.sshfl [vmem:[#allocation1 + $0x8] sm:$0xff pattern:$0x75316420] }
  0x90   : > { %1875 = vst [vmem:[#allocation1] ss:$2 sm:$0xff] %v3340_v24 }
  0x92   : > { %1612 = vrot.lane.b32.xlu2 %v1599_v61, %s3185_s12  ;;  %v2142_v61 = vld.sshfl [vmem:[#allocation1 + $0x28] sm:$0xff pattern:$0x75316420] }
  0x93   : > { %1610 = vrot.lane.b32.xlu1 %v1598_v58, %s3185_s12 }
  0x94   : > { %1356 = vrot.lane.b32.xlu0 %v1337_v56, %s3184_s11  ;;  %v3408_v8 = vpop.permute.xlu2 %328  ;;  %s2705_s11 = scalar_lea.hbm %s3904_s4, %s2993_s8 }
  0x97   : > { %v3440_v33 = vld.sshfl [vmem:[#allocation1 + $0x8] sm:$0xff pattern:$0x75316420]  ;;  %v3442_v34 = vld.sshfl [vmem:[#allocation1] sm:$0xff pattern:$0x75316420] }
  0x98   : > { %2130 = vst [vmem:[#allocation1] ss:$2 sm:$0xff] %v3303_v2 }
  0x9a   : > { %1616 = vrot.lane.b32.xlu2 %v1601_v6, %s3185_s12 }
  0x9b   : > { %1608 = vrot.lane.b32.xlu1 %v1597_v59, %s3185_s12 }
  0x9c   : > { %1614 = vrot.lane.b32.xlu0 %v1600_v60, %s3185_s12  ;;  %v3420_v23 = vpop.permute.xlu2 %806  ;;  %v2141_v60 = vld.sshfl [vmem:[#allocation1 + $0x20] sm:$0xff pattern:$0x75316420] }
  0x9d   : > { %v317_v7 = vpop.permute.xlu1 %316  ;;  %2404 = vst [vmem:[#allocation1 + $0x20] ss:$2 sm:$0xff] %v3297_v0 }
  0x9e   : > { %v313_v10 = vpop.permute.xlu0 %312 }
  0x9f   : > { %v3465_v47 = vld.sshfl [vmem:[#allocation1 + $0x8] sm:$0xff pattern:$0x75316420]  ;;  %v3467_v48 = vld.sshfl [vmem:[#allocation1] sm:$0xff pattern:$0x75316420] }
  0xa0   : > { %2145 = vst [vmem:[#allocation1] ss:$2 sm:$0xff] %v3340_v24 }
  0xa2   : > { %1622 = vrot.lane.b32.xlu2 %v1604_v9, %s3185_s12 }
  0xa3   : > { %1620 = vrot.lane.b32.xlu1 %v1603_v11, %s3185_s12 }
  0xa4   : > { %1618 = vrot.lane.b32.xlu0 %v1602_v5, %s3185_s12  ;;  %v3448_v40 = vpop.permute.xlu2 %812 }
  0xa5   : > { %v319_v22 = vpop.permute.xlu1 %318 }
  0xa6   : > { %v335_v25 = vsel %vm332_vm0, %v317_v7, %v319_v22  ;;  %v336_v26 = vsel %vm332_vm0, %v319_v22, %v321_v57  ;;  %v315_v27 = vpop.permute.xlu0 %314 }
  0xa7   : > { %2821 = vmatpush.msk.msra.mxu2 %vm346_vm1, %v335_v25  ;;  %2823 = vmatpush.msk.msra.mxu3 %vm346_vm1, %v336_v26  ;;  %v333_v29 = vsel %vm332_vm0, %v313_v10, %v315_v27  ;;  %v334_v30 = vsel %vm332_vm0, %v315_v27, %v317_v7  ;;  %v3521_v52 = vld.sshfl [vmem:[#allocation1 + $0x8] sm:$0xff pattern:$0x75316420]  ;;  %v3523_v53 = vld.sshfl [vmem:[#allocation1] sm:$0xff pattern:$0x75316420] }
  0xa8   : > { %2824 = vmatmul.msk.f32.vlgmr.msra.gmra.mxu3 %vm342_vm2, %v2816_v28  ;;  %2822 = vmatmul.msk.f32.vlgmr.msra.gmra.mxu2 %vm342_vm2, %v2816_v28  ;;  %2400 = vst [vmem:[#allocation1] ss:$2 sm:$0xff] %v3303_v2  ;;  %v3540_v2 = vld [vmem:[%s3902_s2 + $0x10] sm:$0xff] }
  0xa9   : > { %2817 = vmatpush.msk.msra.mxu0 %vm346_vm1, %v333_v29  ;;  %2819 = vmatpush.msk.msra.mxu1 %vm346_vm1, %v334_v30 }
  0xaa   : > { %2818 = vmatmul.msk.f32.vlgmr.msra.gmra.mxu0 %vm342_vm2, %v2816_v28  ;;  %2820 = vmatmul.msk.f32.vlgmr.msra.gmra.mxu1 %vm342_vm2, %v2816_v28 }
  0xab   : > { %2825 = vmatpush.msk.msrb.mxu0 %vm346_vm1, %v337_v31  ;;  %1878 = vrot.lane.b32.xlu1 %v1867_v20, %s3186_s22 }
  0xac   : > { %1624 = vrot.lane.b32.xlu0 %v1606_v63, %s3185_s12  ;;  %v3477_v50 = vpop.permute.xlu2 %1074  ;;  %1880 = vrot.lane.b32.xlu2 %v1868_v21, %s3186_s22 }
  0xad   : > { %v327_v39 = vpop.permute.xlu1 %326 }
  0xae   : > { %v340_v41 = vsel %vm332_vm0, %v327_v39, %v3408_v8  ;;  %v325_v42 = vpop.permute.xlu0 %324 }
  0xaf   : > { %2831 = vmatpush.msk.msrb.mxu3 %vm346_vm1, %v340_v41  ;;  %v338_v43 = vsel %vm332_vm0, %v323_v4, %v325_v42  ;;  %v339_v44 = vsel %vm332_vm0, %v325_v42, %v327_v39  ;;  %v2407_v9 = vld.sshfl [vmem:[#allocation1] sm:$0xff pattern:$0x75316420]  ;;  %v2408_v10 = vld.sshfl [vmem:[#allocation1 + $0x8] sm:$0xff pattern:$0x75316420] }
  0xb0   : > { %2832 = vmatmul.msk.f32.vlgmr.msrb.gmra.mxu3 %vm342_vm2, %v2816_v28  ;;  %2827 = vmatpush.msk.msrb.mxu1 %vm346_vm1, %v338_v43  ;;  %2415 = vst [vmem:[#allocation1] ss:$2 sm:$0xff] %v3340_v24 }
  0xb1   : > { %2829 = vmatpush.msk.msrb.mxu2 %vm346_vm1, %v339_v44  ;;  %2839 = vmatpush.msk.msra.mxu3 %vm346_vm1, %v3326_v16  ;;  %v281_v16 = vld [vmem:[%s3902_s2] sm:$0xff] }
  0xb2   : > { %2826 = vmatmul.msk.f32.vlgmr.msrb.gmra.mxu0 %vm342_vm2, %v2816_v28  ;;  %2828 = vmatmul.msk.f32.vlgmr.msrb.gmra.mxu1 %vm342_vm2, %v2816_v28 }
  0xb3   : > { %1626 = vrot.lane.b32.xlu1 %v3399_v62, %s3185_s12  ;;  %2835 = vmatpush.msk.msra.mxu1 %vm346_vm1, %v3354_v36  ;;  %s2709_s12 = sshll.u32 %s2705_s11, 4  ;;  %s2710_s12 = int_to_ptr.hbm [resolvable:$true] %s2709_s12 }
  0xb4   : > { %1882 = vrot.lane.b32.xlu0 %v1869_v32, %s3186_s22  ;;  %2847 = vmatpush.msk.msrb.mxu3 %vm346_vm1, %v3333_v18  ;;  %v3502_v18 = vld.sshfl [vmem:[#allocation1 + $0x38] sm:$0xff pattern:$0x75316420]  ;;  %v3509_v51 = vpop.permute.xlu2 %1080  ;;  %s3111_s14 = sshra.s32 %s2710_s12, 4  ;;  %s3112_s14 = int_to_ptr.hbm [resolvable:$true] %s3111_s14 }
  0xb5   : > { %2843 = vmatpush.msk.msrb.mxu1 %vm346_vm1, %v3320_v13  ;;  %v805_v49 = vpop.permute.xlu1 %804  ;;  %2830 = vmatmul.msk.f32.vlgmr.msrb.gmra.mxu2 %vm342_vm2, %v2816_v28  ;;  %p3118_p8 = scmp.lt.s32.totalorder %s3112_s14, %s3904_s4 }
  0xb6   : > { %v331_v36 = vpop.permute.xlu0 %330  ;;  %2837 = vmatpush.msk.msra.mxu2 %vm346_vm1, %v3356_v37  ;;  %1884 = vrot.lane.b32.xlu2 %v1870_v35, %s3186_s22 }
  0xb7   : > { %v341_v13 = vsel %vm332_vm0, %v3408_v8, %v331_v36 }
  0xb8   : > { %2840 = vmatmul.msk.f32.vlgmr.msra.gmra.mxu3 %vm342_vm2, %v281_v16  ;;  %2845 = vmatpush.msk.msrb.mxu2 %vm346_vm1, %v3322_v14  ;;  %v3504_v14 = vld.sshfl [vmem:[#allocation1 + $0x30] sm:$0xff pattern:$0x75316420] }
  0xb9   : > { %2833 = vmatpush.msk.msra.mxu0 %vm346_vm1, %v341_v13  ;;  %2406 = vst [vmem:[#allocation1 + $0x30] ss:$2 sm:$0xff] %v3306_v3  ;;  %v2140_v3 = vld.sshfl [vmem:[#allocation1 + $0x18] sm:$0xff pattern:$0x75316420] }
  0xba   : > { %2834 = vmatmul.msk.f32.vlgmr.msra.gmra.mxu0 %vm342_vm2, %v2816_v28  ;;  %2836 = vmatmul.msk.f32.vlgmr.msra.gmra.mxu1 %vm342_vm2, %v281_v16  ;;  %2402 = vst [vmem:[#allocation1 + $0x10] ss:$2 sm:$0xff] %v3299_v1  ;;  %v2872_v28 = vld [vmem:[%s3902_s2 + $0x18] sm:$0xff] }
  0xbb   : > { %1888 = vrot.lane.b32.xlu1 %v3412_v15, %s3186_s22  ;;  %2841 = vmatpush.msk.msrb.mxu0 %vm346_vm1, %v3328_v17 }
  0xbc   : > { %2851 = vmatpush.msk.msra.mxu1 %vm346_vm1, %v3361_v38  ;;  %1886 = vrot.lane.b32.xlu0 %v3410_v12, %s3186_s22  ;;  %v822_v38 = vsel %vm818_vm3, %v805_v49, %v3420_v23  ;;  %v801_v56 = vpop.permute.xlu2 %800 }
  0xbd   : > { %2849 = vmatpush.msk.msra.mxu0 %vm346_vm1, %v3335_v19  ;;  %v811_v37 = vpop.permute.xlu1 %810  ;;  %2838 = vmatmul.msk.f32.vlgmr.msra.gmra.mxu2 %vm342_vm2, %v281_v16 }
  0xbe   : > { %v803_v17 = vpop.permute.xlu0 %802  ;;  %1890 = vrot.lane.b32.xlu2 %v1873_v46, %s3186_s22  ;;  %v825_v1 = vsel %vm818_vm3, %v811_v37, %v3448_v40  ;;  %v2412_v46 = vld.sshfl [vmem:[#allocation1 + $0x28] sm:$0xff pattern:$0x75316420] }
  0xbf   : > { %v821_v19 = vsel %vm818_vm3, %v803_v17, %v805_v49  ;;  %v820_v57 = vsel %vm818_vm3, %v801_v56, %v803_v17 }
  0xc0   : > { %2848 = vmatmul.msk.f32.vlgmr.msrb.gmra.mxu3 %vm342_vm2, %v281_v16 }
  0xc1   : > { %2856 = vmatpush.msk.msra.mxu3 %vm346_vm1, %v820_v57  ;;  %v2410_v31 = vld.sshfl [vmem:[#allocation1 + $0x18] sm:$0xff pattern:$0x75316420] }
  0xc2   : > { %2842 = vmatmul.msk.f32.vlgmr.msrb.gmra.mxu0 %vm342_vm2, %v281_v16  ;;  %2844 = vmatmul.msk.f32.vlgmr.msrb.gmra.mxu1 %vm342_vm2, %v281_v16 }
  0xc3   : > { %2858 = vmatpush.msk.msrb.mxu0 %vm346_vm1, %v821_v19  ;;  %2860 = vmatpush.msk.msrb.mxu1 %vm346_vm1, %v822_v38 }
  0xc4   : > { %1894 = vrot.lane.b32.xlu1 %v3442_v34, %s3186_s22  ;;  %1892 = vrot.lane.b32.xlu0 %v1874_v45, %s3186_s22  ;;  %v3555_v63 = vpop.permute.xlu2 %1342  ;;  %v2413_v45 = vld.sshfl [vmem:[#allocation1 + $0x30] sm:$0xff pattern:$0x75316420] }
  0xc5   : > { %v3529_v55 = vpop.permute.xlu1 %1072  ;;  %2846 = vmatmul.msk.f32.vlgmr.msrb.gmra.mxu2 %vm342_vm2, %v281_v16 }
  0xc6   : > { %v809_v58 = vpop.permute.xlu0 %808  ;;  %1896 = vrot.lane.b32.xlu2 %v3440_v33, %s3186_s22  ;;  %v1091_v22 = vsel %vm1088_vm4, %v3529_v55, %v3477_v50  ;;  %v2409_v33 = vld.sshfl [vmem:[#allocation1 + $0x10] sm:$0xff pattern:$0x75316420]  ;;  %s3113_s22 = scalar_lea.hbm %s3112_s14, 72 }
  0xc7   : > { %v824_v59 = vsel %vm818_vm3, %v809_v58, %v811_v37  ;;  %v823_v8 = vsel %vm818_vm3, %v3420_v23, %v809_v58  ;;  %v2416_v37 = vld.sshfl [vmem:[#allocation1] sm:$0xff pattern:$0x75316420]  ;;  %p3114_p5 = scmp.ne.s32.totalorder %s3112_s14, %s3113_s22  ;;  %p3119_p10 = scmp.lt.s32.totalorder %s3117_s26, %s3113_s22 }
  0xc8   : > { %2864 = vmatpush.msk.msrb.mxu3 %vm346_vm1, %v824_v59 }
  0xc9   : > { %2857 = vmatmul.msk.f32.vlgmr.msra.gmra.mxu3 %vm342_vm2, %v3540_v2  ;;  %p3115_p6 = pnand %p3114_p5, %p3266_p9  ;;  %p3120_p13 = por %p3119_p10, %p3118_p8 }
  0xca   : > { %2850 = vmatmul.msk.f32.vlgmr.msra.gmra.mxu0 %vm342_vm2, %v281_v16  ;;  %2852 = vmatmul.msk.f32.vlgmr.msra.gmra.mxu1 %vm342_vm2, %v281_v16  ;;  %v2891_v16 = vld [vmem:[%s3902_s2 + $0x20] sm:$0xff] }
  0xcb   : > { %2866 = vmatpush.msk.msra.mxu0 %vm346_vm1, %v825_v1  ;;  %p3116_p7 = pneg %p3115_p6 }
  0xcc   : > { %2150 = vrot.lane.b32.xlu1 %v3465_v47, %s3187_s5  ;;  %2148 = vrot.lane.b32.xlu0 %v3467_v48, %s3187_s5  ;;  %v1069_v6 = vpop.permute.xlu2 %1068  ;;  %v2411_v47 = vld.sshfl [vmem:[#allocation1 + $0x20] sm:$0xff pattern:$0x75316420] }
  0xcd   : > { %v1079_v62 = vpop.permute.xlu1 %1078  ;;  %p3121_p0 = pnand %p3120_p13, %p3116_p7 }
  0xce   : > { %v1077_v4 = vpop.permute.xlu0 %1076  ;;  %2152 = vrot.lane.b32.xlu2 %v2139_v54, %s3187_s5  ;;  %v1094_v34 = vsel %vm1088_vm4, %v1079_v62, %v3509_v51 }
  0xcf   : > { %v1092_v24 = vsel %vm1088_vm4, %v3477_v50, %v1077_v4  ;;  %v1093_v32 = vsel %vm1088_vm4, %v1077_v4, %v1079_v62 }
  0xd1   : > { %2865 = vmatmul.msk.f32.vlgmr.msrb.gmra.mxu3 %vm342_vm2, %v3540_v2 }
  0xd2   : > { %2859 = vmatmul.msk.f32.vlgmr.msrb.gmra.mxu0 %vm342_vm2, %v3540_v2  ;;  %2861 = vmatmul.msk.f32.vlgmr.msrb.gmra.mxu1 %vm342_vm2, %v3540_v2 }
  0xd4   : > { %2156 = vrot.lane.b32.xlu1 %v2141_v60, %s3187_s5  ;;  %2154 = vrot.lane.b32.xlu0 %v2140_v3, %s3187_s5  ;;  %v1087_v12 = vpop.permute.xlu2 %1086 }
  0xd5   : > { %v799_v0 = vpop.permute.xlu1 %798 }
  0xd6   : > { %v819_v5 = vsel %vm818_vm3, %v799_v0, %v801_v56  ;;  %v1083_v7 = vpop.permute.xlu0 %1082  ;;  %2158 = vrot.lane.b32.xlu2 %v2142_v61, %s3187_s5 }
  0xd7   : > { %2854 = vmatpush.msk.msra.mxu2 %vm346_vm1, %v819_v5  ;;  %v1095_v23 = vsel %vm1088_vm4, %v3509_v51, %v1083_v7  ;;  %v2414_v51 = vld.sshfl [vmem:[#allocation1 + $0x38] sm:$0xff pattern:$0x75316420] }
  0xd8   : > { %2855 = vmatmul.msk.f32.vlgmr.msra.gmra.mxu2 %vm342_vm2, %v3540_v2 }
  0xd9   : > { %2862 = vmatpush.msk.msrb.mxu2 %vm346_vm1, %v823_v8 }
  0xda   : > { %2867 = vmatmul.msk.f32.vlgmr.msra.gmra.mxu0 %vm342_vm2, %v3540_v2 }
  0xdc   : > { %2162 = vrot.lane.b32.xlu1 %v3502_v18, %s3187_s5  ;;  %2160 = vrot.lane.b32.xlu0 %v3504_v14, %s3187_s5  ;;  %v3605_v26 = vpop.permute.xlu2 %1348  ;;  %v2417_v18 = vld.sshfl [vmem:[#allocation1 + $0x8] sm:$0xff pattern:$0x75316420] }
  0xdd   : > { %v817_v11 = vpop.permute.xlu1 %816 }
  0xde   : > { %v815_v15 = vpop.permute.xlu0 %814  ;;  %2164 = vrot.lane.b32.xlu2 %v3523_v53, %s3187_s5 }
  0xdf   : > { %v826_v20 = vsel %vm818_vm3, %v3448_v40, %v815_v15  ;;  %v827_v21 = vsel %vm818_vm3, %v815_v15, %v817_v11 }
  0xe0   : > { %2863 = vmatmul.msk.f32.vlgmr.msrb.gmra.mxu2 %vm342_vm2, %v3540_v2  ;;  %2868 = vmatpush.msk.msra.mxu1 %vm346_vm1, %v826_v20 }
  0xe1   : > { %2870 = vmatpush.msk.msra.mxu2 %vm346_vm1, %v827_v21  ;;  %2869 = vmatmul.msk.f32.vlgmr.msra.gmra.mxu1 %vm342_vm2, %v3540_v2 }
  0xe2   : > { %2877 = vmatpush.msk.msrb.mxu1 %vm346_vm1, %v1091_v22 }
  0xe3   : > { %2879 = vmatpush.msk.msrb.mxu2 %vm346_vm1, %v1092_v24 }
  0xe4   : > { %2885 = vmatpush.msk.msra.mxu1 %vm346_vm1, %v1095_v23  ;;  %2418 = vrot.lane.b32.xlu1 %v2407_v9, %s3188_s6  ;;  %v1355_v41 = vpop.permute.xlu2 %1354 }
  0xe5   : > { %2166 = vrot.lane.b32.xlu0 %v3521_v52, %s3187_s5  ;;  %v1347_v25 = vpop.permute.xlu1 %1346 }
  0xe6   : > { %v1071_v27 = vpop.permute.xlu0 %1070  ;;  %2420 = vrot.lane.b32.xlu2 %v2408_v10, %s3188_s6  ;;  %v1363_v14 = vsel %vm1358_vm5, %v1347_v25, %v3605_v26 }
  0xe7   : > { %v1089_v29 = vsel %vm1088_vm4, %v1069_v6, %v1071_v27  ;;  %v1090_v30 = vsel %vm1088_vm4, %v1071_v27, %v3529_v55 }
  0xe8   : > { %2871 = vmatmul.msk.f32.vlgmr.msra.gmra.mxu2 %vm342_vm2, %v3540_v2  ;;  %2873 = vmatpush.msk.msra.mxu3 %vm346_vm1, %v1089_v29  ;;  %v2910_v2 = vld [vmem:[%s3902_s2 + $0x28] sm:$0xff] }
  0xe9   : > { %2875 = vmatpush.msk.msrb.mxu0 %vm346_vm1, %v1090_v30  ;;  %2874 = vmatmul.msk.f32.vlgmr.msra.gmra.mxu3 %vm342_vm2, %v2872_v28 }
  0xea   : > { %2876 = vmatmul.msk.f32.vlgmr.msrb.gmra.mxu0 %vm342_vm2, %v2872_v28  ;;  %2878 = vmatmul.msk.f32.vlgmr.msrb.gmra.mxu1 %vm342_vm2, %v2872_v28 }
  0xeb   : > { %2881 = vmatpush.msk.msrb.mxu3 %vm346_vm1, %v1093_v32  ;;  %2883 = vmatpush.msk.msra.mxu0 %vm346_vm1, %v1094_v34 }
  0xec   : > { %2424 = vrot.lane.b32.xlu1 %v2410_v31, %s3188_s6  ;;  %v1613_v50 = vpop.permute.xlu2 %1612 }
  0xed   : > { %2422 = vrot.lane.b32.xlu0 %v2409_v33, %s3188_s6  ;;  %v1085_v35 = vpop.permute.xlu1 %1084 }
  0xee   : > { %v1096_v39 = vsel %vm1088_vm4, %v1083_v7, %v1085_v35  ;;  %v1097_v40 = vsel %vm1088_vm4, %v1085_v35, %v1087_v12  ;;  %v1345_v42 = vpop.permute.xlu0 %1344  ;;  %2426 = vrot.lane.b32.xlu2 %v2411_v47, %s3188_s6  ;;  %v2929_v12 = vld [vmem:[%s3902_s2 + $0x30] sm:$0xff] }
  0xef   : > { %2887 = vmatpush.msk.msra.mxu2 %vm346_vm1, %v1096_v39  ;;  %2889 = vmatpush.msk.msra.mxu3 %vm346_vm1, %v1097_v40  ;;  %v1361_v43 = vsel %vm1358_vm5, %v3555_v63, %v1345_v42  ;;  %v1362_v44 = vsel %vm1358_vm5, %v1345_v42, %v1347_v25 }
  0xf0   : > { %2880 = vmatmul.msk.f32.vlgmr.msrb.gmra.mxu2 %vm342_vm2, %v2872_v28 }
  0xf1   : > { %2896 = vmatpush.msk.msrb.mxu2 %vm346_vm1, %v1361_v43  ;;  %2882 = vmatmul.msk.f32.vlgmr.msrb.gmra.mxu3 %vm342_vm2, %v2872_v28 }
  0xf2   : > { %2884 = vmatmul.msk.f32.vlgmr.msra.gmra.mxu0 %vm342_vm2, %v2872_v28  ;;  %2886 = vmatmul.msk.f32.vlgmr.msra.gmra.mxu1 %vm342_vm2, %v2872_v28 }
  0xf3   : > { %2898 = vmatpush.msk.msrb.mxu3 %vm346_vm1, %v1362_v44 }
  0xf4   : > { %2430 = vrot.lane.b32.xlu1 %v2413_v45, %s3188_s6  ;;  %v1617_v38 = vpop.permute.xlu2 %1616 }
  0xf5   : > { %2428 = vrot.lane.b32.xlu0 %v2412_v46, %s3188_s6  ;;  %v1341_v48 = vpop.permute.xlu1 %1340 }
  0xf6   : > { %v1360_v49 = vsel %vm1358_vm5, %v1341_v48, %v3555_v63  ;;  %v1339_v36 = vpop.permute.xlu0 %1338  ;;  %2432 = vrot.lane.b32.xlu2 %v2414_v51, %s3188_s6 }
  0xf7   : > { %2894 = vmatpush.msk.msrb.mxu1 %vm346_vm1, %v1360_v49  ;;  %v1359_v13 = vsel %vm1358_vm5, %v1339_v36, %v1341_v48 }
  0xf8   : > { %2888 = vmatmul.msk.f32.vlgmr.msra.gmra.mxu2 %vm342_vm2, %v2872_v28  ;;  %2892 = vmatpush.msk.msrb.mxu0 %vm346_vm1, %v1359_v13 }
  0xf9   : > { %2890 = vmatmul.msk.f32.vlgmr.msra.gmra.mxu3 %vm342_vm2, %v2872_v28 }
  0xfa   : > { %2893 = vmatmul.msk.f32.vlgmr.msrb.gmra.mxu0 %vm342_vm2, %v2891_v16  ;;  %2895 = vmatmul.msk.f32.vlgmr.msrb.gmra.mxu1 %vm342_vm2, %v2891_v16 }
  0xfb   : > { %2900 = vmatpush.msk.msra.mxu0 %vm346_vm1, %v1363_v14 }
  0xfc   : > { %2436 = vrot.lane.b32.xlu1 %v2417_v18, %s3188_s6  ;;  %v1623_v56 = vpop.permute.xlu2 %1622 }
  0xfd   : > { %2434 = vrot.lane.b32.xlu0 %v2416_v37, %s3188_s6  ;;  %v1353_v17 = vpop.permute.xlu1 %1352  ;;  %s2992_s6 = smul.u32 72, %s3289_s21 }
  0xfe   : > { %v1366_v19 = vsel %vm1358_vm5, %v1353_v17, %v1355_v41  ;;  %v1351_v3 = vpop.permute.xlu0 %1350 }
  0xff   : > { %2906 = vmatpush.msk.msra.mxu3 %vm346_vm1, %v1366_v19  ;;  %v1364_v52 = vsel %vm1358_vm5, %v3605_v26, %v1351_v3  ;;  %v1365_v53 = vsel %vm1358_vm5, %v1351_v3, %v1353_v17  ;;  %v2948_v17 = vld [vmem:[%s3902_s2 + $0x38] sm:$0xff]  ;;  %s3838_s7 = scalar_lea.vmem [#allocation6], %s2992_s6 }
 0x100   : > { %2897 = vmatmul.msk.f32.vlgmr.msrb.gmra.mxu2 %vm342_vm2, %v2891_v16  ;;  %2902 = vmatpush.msk.msra.mxu1 %vm346_vm1, %v1364_v52  ;;  %s2707_s18 = sshll.u32 %s3838_s7, 4  ;;  %s2708_s18 = int_to_ptr.vmem [resolvable:$true] %s2707_s18 }
 0x101   : > { %2904 = vmatpush.msk.msra.mxu2 %vm346_vm1, %v1365_v53  ;;  %2899 = vmatmul.msk.f32.vlgmr.msrb.gmra.mxu3 %vm342_vm2, %v2891_v16 }
 0x102   : > { %2901 = vmatmul.msk.f32.vlgmr.msra.gmra.mxu0 %vm342_vm2, %v2891_v16  ;;  %2903 = vmatmul.msk.f32.vlgmr.msra.gmra.mxu1 %vm342_vm2, %v2891_v16 }
 0x105   : > { %v1611_v54 = vpop.permute.xlu1 %1610 }
 0x106   : > { %v1630_v55 = vsel %vm1628_vm6, %v1611_v54, %v1613_v50  ;;  %v1357_v57 = vpop.permute.xlu0 %1356  ;;  %v1881_v63 = vpop.permute.xlu2 %1880 }
 0x107   : > { %2913 = vmatpush.msk.msrb.mxu2 %vm346_vm1, %v1630_v55  ;;  %v1367_v58 = vsel %vm1358_vm5, %v1355_v41, %v1357_v57 }
 0x108   : > { %2905 = vmatmul.msk.f32.vlgmr.msra.gmra.mxu2 %vm342_vm2, %v2891_v16  ;;  %2908 = vmatpush.msk.msrb.mxu0 %vm346_vm1, %v1367_v58 }
 0x109   : > { %2907 = vmatmul.msk.f32.vlgmr.msra.gmra.mxu3 %vm342_vm2, %v2891_v16 }
 0x10a   : > { %2909 = vmatmul.msk.f32.vlgmr.msrb.gmra.mxu0 %vm342_vm2, %v2891_v16 }
 0x10d   : > { %v1609_v59 = vpop.permute.xlu1 %1608 }
 0x10e   : > { %v1629_v1 = vsel %vm1628_vm6, %v1609_v59, %v1611_v54  ;;  %v1615_v60 = vpop.permute.xlu0 %1614 }
 0x10f   : > { %2911 = vmatpush.msk.msrb.mxu1 %vm346_vm1, %v1629_v1  ;;  %v1631_v61 = vsel %vm1628_vm6, %v1613_v50, %v1615_v60  ;;  %v1632_v62 = vsel %vm1628_vm6, %v1615_v60, %v1617_v38 }
 0x110   : > { %2912 = vmatmul.msk.f32.vlgmr.msrb.gmra.mxu1 %vm342_vm2, %v2910_v2  ;;  %2914 = vmatmul.msk.f32.vlgmr.msrb.gmra.mxu2 %vm342_vm2, %v2910_v2  ;;  %v1885_v8 = vpop.permute.xlu2 %1884 }
 0x111   : > { %2915 = vmatpush.msk.msrb.mxu3 %vm346_vm1, %v1631_v61  ;;  %2917 = vmatpush.msk.msra.mxu0 %vm346_vm1, %v1632_v62 }
 0x112   : > { %2916 = vmatmul.msk.f32.vlgmr.msrb.gmra.mxu3 %vm342_vm2, %v2910_v2  ;;  %2918 = vmatmul.msk.f32.vlgmr.msra.gmra.mxu0 %vm342_vm2, %v2910_v2 }
 0x115   : > { %v1621_v4 = vpop.permute.xlu1 %1620 }
 0x116   : > { %v1635_v0 = vsel %vm1628_vm6, %v1621_v4, %v1623_v56  ;;  %v1619_v5 = vpop.permute.xlu0 %1618 }
 0x117   : > { %2923 = vmatpush.msk.msra.mxu3 %vm346_vm1, %v1635_v0  ;;  %v1633_v6 = vsel %vm1628_vm6, %v1617_v38, %v1619_v5  ;;  %v1634_v7 = vsel %vm1628_vm6, %v1619_v5, %v1621_v4 }
 0x118   : > { %2919 = vmatpush.msk.msra.mxu1 %vm346_vm1, %v1633_v6  ;;  %2921 = vmatpush.msk.msra.mxu2 %vm346_vm1, %v1634_v7  ;;  %v1891_v20 = vpop.permute.xlu2 %1890 }
 0x119   : > { %2920 = vmatmul.msk.f32.vlgmr.msra.gmra.mxu1 %vm342_vm2, %v2910_v2  ;;  %2922 = vmatmul.msk.f32.vlgmr.msra.gmra.mxu2 %vm342_vm2, %v2910_v2 }
 0x11a   : > { %2924 = vmatmul.msk.f32.vlgmr.msra.gmra.mxu3 %vm342_vm2, %v2910_v2 }
 0x11d   : > { %v1879_v9 = vpop.permute.xlu1 %1878 }
 0x11e   : > { %v1899_v10 = vsel %vm1898_vm7, %v1879_v9, %v1881_v63  ;;  %v1625_v11 = vpop.permute.xlu0 %1624 }
 0x11f   : > { %2930 = vmatpush.msk.msrb.mxu2 %vm346_vm1, %v1899_v10  ;;  %v1636_v15 = vsel %vm1628_vm6, %v1623_v56, %v1625_v11 }
 0x120   : > { %2925 = vmatpush.msk.msrb.mxu0 %vm346_vm1, %v1636_v15  ;;  %v1897_v28 = vpop.permute.xlu2 %1896 }
 0x121   : > { %2926 = vmatmul.msk.f32.vlgmr.msrb.gmra.mxu0 %vm342_vm2, %v2910_v2  ;;  %2931 = vmatmul.msk.f32.vlgmr.msrb.gmra.mxu2 %vm342_vm2, %v2929_v12 }
 0x125   : > { %v1627_v21 = vpop.permute.xlu1 %1626 }
 0x126   : > { %v1637_v24 = vsel %vm1628_vm6, %v1625_v11, %v1627_v21  ;;  %v1883_v22 = vpop.permute.xlu0 %1882 }
 0x127   : > { %2927 = vmatpush.msk.msrb.mxu1 %vm346_vm1, %v1637_v24  ;;  %v382_v23 = vpop.f32.mrf.mxu0  ;;  %v1900_v25 = vsel %vm1898_vm7, %v1881_v63, %v1883_v22  ;;  %v1901_v26 = vsel %vm1898_vm7, %v1883_v22, %v1885_v8  ;;  %v402_v27 = vpop.f32.mrf.mxu1 }
 0x128   : > { %2928 = vmatmul.msk.f32.vlgmr.msrb.gmra.mxu1 %vm342_vm2, %v2910_v2  ;;  %2932 = vmatpush.msk.msrb.mxu3 %vm346_vm1, %v1900_v25  ;;  %v2153_v41 = vpop.permute.xlu2 %2152 }
 0x129   : > { %2934 = vmatpush.msk.msra.mxu0 %vm346_vm1, %v1901_v26  ;;  %2933 = vmatmul.msk.f32.vlgmr.msrb.gmra.mxu3 %vm342_vm2, %v2929_v12 }
 0x12a   : > { %2935 = vmatmul.msk.f32.vlgmr.msra.gmra.mxu0 %vm342_vm2, %v2929_v12 }
 0x12b   : > { %v442_v29 = vpop.f32.mrf.mxu3  ;;  %v422_v32 = vpop.f32.mrf.mxu2 }
 0x12d   : > { %v1889_v30 = vpop.permute.xlu1 %1888 }
 0x12e   : > { %v1904_v31 = vsel %vm1898_vm7, %v1889_v30, %v1891_v20  ;;  %v1887_v33 = vpop.permute.xlu0 %1886 }
 0x12f   : > { %2940 = vmatpush.msk.msra.mxu3 %vm346_vm1, %v1904_v31  ;;  %v462_v34 = vpop.f32.mrf.mxu0  ;;  %v1902_v35 = vsel %vm1898_vm7, %v1885_v8, %v1887_v33  ;;  %v1903_v39 = vsel %vm1898_vm7, %v1887_v33, %v1889_v30  ;;  %v482_v40 = vpop.f32.mrf.mxu1 }
 0x130   : > { %2936 = vmatpush.msk.msra.mxu1 %vm346_vm1, %v1902_v35  ;;  %2938 = vmatpush.msk.msra.mxu2 %vm346_vm1, %v1903_v39  ;;  %v2159_v13 = vpop.permute.xlu2 %2158 }
 0x131   : > { %2937 = vmatmul.msk.f32.vlgmr.msra.gmra.mxu1 %vm342_vm2, %v2929_v12  ;;  %2939 = vmatmul.msk.f32.vlgmr.msra.gmra.mxu2 %vm342_vm2, %v2929_v12 }
 0x132   : > { %2941 = vmatmul.msk.f32.vlgmr.msra.gmra.mxu3 %vm342_vm2, %v2929_v12 }
 0x133   : > { %v522_v42 = vpop.f32.mrf.mxu3 }
 0x136   : > { %v1895_v43 = vpop.permute.xlu1 %1894  ;;  %v1893_v44 = vpop.permute.xlu0 %1892 }
 0x137   : > { %v1907_v45 = vsel %vm1898_vm7, %v1895_v43, %v1897_v28  ;;  %v542_v46 = vpop.f32.mrf.mxu0  ;;  %v1905_v47 = vsel %vm1898_vm7, %v1891_v20, %v1893_v44  ;;  %v1906_v48 = vsel %vm1898_vm7, %v1893_v44, %v1895_v43  ;;  %v605_v49 = vpop.f32.mrf.mxu1  ;;  %v3189_v44 = vmov 0  }
 0x138   : > { %2946 = vmatpush.msk.msrb.mxu2 %vm346_vm1, %v1907_v45  ;;  %2942 = vmatpush.msk.msrb.mxu0 %vm346_vm1, %v1905_v47  ;;  %v3737_v50 = vadd.f32 %v605_v49, %v382_v23  ;;  %v502_v36 = vpop.f32.mrf.mxu2  ;;  %v2165_v59 = vpop.permute.xlu2 %2164 }
 0x139   : > { %2944 = vmatpush.msk.msrb.mxu1 %vm346_vm1, %v1906_v48  ;;  %2943 = vmatmul.msk.f32.vlgmr.msrb.gmra.mxu0 %vm342_vm2, %v2929_v12  ;;  %v2658_v48 = vld [vmem:[%s3903_s3] sm:$0xff] }
 0x13a   : > { %2945 = vmatmul.msk.f32.vlgmr.msrb.gmra.mxu1 %vm342_vm2, %v2929_v12  ;;  %2947 = vmatmul.msk.f32.vlgmr.msrb.gmra.mxu2 %vm342_vm2, %v2929_v12 }
 0x13b   : > { %v645_v16 = vpop.f32.mrf.mxu3  ;;  %3065 = vset.pattern.permute.xlu2 %v3189_v44  ;;  %3066 = vset.pattern.permute.xlu0 %v3189_v44 }
 0x13c   : > { %v646_v18 = vadd.f32 %v645_v16, %v422_v32  ;;  %2661 = vperm.xlu2 %3065, %v2658_v48  }
 0x13e   : > { %v2151_v14 = vpop.permute.xlu1 %2150  ;;  %v2149_v51 = vpop.permute.xlu0 %2148 }
 0x13f   : > { %v2170_v37 = vsel %vm2168_vm8, %v2151_v14, %v2153_v41  ;;  %v665_v19 = vpop.f32.mrf.mxu0  ;;  %v2169_v38 = vsel %vm2168_vm8, %v2149_v51, %v2151_v14  ;;  %v685_v52 = vpop.f32.mrf.mxu1 }
 0x140   : > { %2951 = vmatpush.msk.msra.mxu0 %vm346_vm1, %v2170_v37  ;;  %v666_v3 = vadd.f32 %v665_v19, %v442_v29  ;;  %2949 = vmatpush.msk.msrb.mxu3 %vm346_vm1, %v2169_v38  ;;  %v3749_v53 = vadd.f32 %v685_v52, %v462_v34  ;;  %v625_v54 = vpop.f32.mrf.mxu2  ;;  %v2421_v24 = vpop.permute.xlu2 %2420  ;;  %v3779_v29 = vld [vmem:[%s3902_s2 + $0x40] sm:$0xff] }
 0x141   : > { %2950 = vmatmul.msk.f32.vlgmr.msrb.gmra.mxu3 %vm342_vm2, %v2948_v17  ;;  %2952 = vmatmul.msk.f32.vlgmr.msra.gmra.mxu0 %vm342_vm2, %v2948_v17  ;;  %v626_v55 = vadd.f32 %v625_v54, %v402_v27 }
 0x143   : > { %v725_v56 = vpop.f32.mrf.mxu3 }
 0x144   : > { %v726_v57 = vadd.f32 %v725_v56, %v502_v36 }
 0x146   : > { %v2157_v58 = vpop.permute.xlu1 %2156  ;;  %v2155_v1 = vpop.permute.xlu0 %2154 }
 0x147   : > { %v2173_v2 = vsel %vm2168_vm8, %v2157_v58, %v2159_v13  ;;  %v745_v60 = vpop.f32.mrf.mxu0  ;;  %v2171_v61 = vsel %vm2168_vm8, %v2153_v41, %v2155_v1  ;;  %v2172_v62 = vsel %vm2168_vm8, %v2155_v1, %v2157_v58  ;;  %v765_v4 = vpop.f32.mrf.mxu1 }
 0x148   : > { %2957 = vmatpush.msk.msra.mxu3 %vm346_vm1, %v2173_v2  ;;  %v746_v63 = vadd.f32 %v745_v60, %v522_v42  ;;  %2953 = vmatpush.msk.msra.mxu1 %vm346_vm1, %v2171_v61  ;;  %v3759_v0 = vadd.f32 %v765_v4, %v542_v46  ;;  %v705_v5 = vpop.f32.mrf.mxu2  ;;  %v2427_v34 = vpop.permute.xlu2 %2426 }
 0x149   : > { %2955 = vmatpush.msk.msra.mxu2 %vm346_vm1, %v2172_v62  ;;  %2954 = vmatmul.msk.f32.vlgmr.msra.gmra.mxu1 %vm342_vm2, %v2948_v17  ;;  %v706_v6 = vadd.f32 %v705_v5, %v482_v40 }
 0x14a   : > { %2956 = vmatmul.msk.f32.vlgmr.msra.gmra.mxu2 %vm342_vm2, %v2948_v17  ;;  %2958 = vmatmul.msk.f32.vlgmr.msra.gmra.mxu3 %vm342_vm2, %v2948_v17 }
 0x14c   : > { %v886_v8 = vpop.f32.mrf.mxu3 }
 0x14d   : > { %v1030_v12 = vadd.f32 %v886_v8, %v626_v55 }
 0x14e   : > { %v2163_v7 = vpop.permute.xlu1 %2162  ;;  %v2161_v9 = vpop.permute.xlu0 %2160 }
 0x14f   : > { %v2176_v10 = vsel %vm2168_vm8, %v2163_v7, %v2165_v59  ;;  %v906_v11 = vpop.f32.mrf.mxu0  ;;  %v2174_v15 = vsel %vm2168_vm8, %v2159_v13, %v2161_v9  ;;  %v2175_v20 = vsel %vm2168_vm8, %v2161_v9, %v2163_v7  ;;  %v926_v22 = vpop.f32.mrf.mxu1 }
 0x150   : > { %2963 = vmatpush.msk.msrb.mxu2 %vm346_vm1, %v2176_v10  ;;  %v1031_v21 = vadd.f32 %v906_v11, %v646_v18  ;;  %2959 = vmatpush.msk.msrb.mxu0 %vm346_vm1, %v2174_v15  ;;  %v3770_v23 = vadd.f32 %v926_v22, %v666_v3  ;;  %v2433_v36 = vpop.permute.xlu2 %2432 }
 0x151   : > { %2961 = vmatpush.msk.msrb.mxu1 %vm346_vm1, %v2175_v20  ;;  %2960 = vmatmul.msk.f32.vlgmr.msrb.gmra.mxu0 %vm342_vm2, %v2948_v17 }
 0x152   : > { %2962 = vmatmul.msk.f32.vlgmr.msrb.gmra.mxu1 %vm342_vm2, %v2948_v17  ;;  %2964 = vmatmul.msk.f32.vlgmr.msrb.gmra.mxu2 %vm342_vm2, %v2948_v17 }
 0x154   : > { %v966_v26 = vpop.f32.mrf.mxu3 }
 0x155   : > { %v1034_v31 = vadd.f32 %v966_v26, %v706_v6 }
 0x156   : > { %v2419_v25 = vpop.permute.xlu1 %2418 }
 0x157   : > { %v2167_v27 = vpop.permute.xlu0 %2166  ;;  %v2439_v28 = vsel %vm2438_vm9, %v2419_v25, %v2421_v24  ;;  %v986_v30 = vpop.f32.mrf.mxu0 }
 0x158   : > { %v2177_v32 = vsel %vm2168_vm8, %v2165_v59, %v2167_v27  ;;  %2968 = vmatpush.msk.msra.mxu0 %vm346_vm1, %v2439_v28  ;;  %v1035_v33 = vadd.f32 %v986_v30, %v726_v57 }
 0x159   : > { %2965 = vmatpush.msk.msrb.mxu3 %vm346_vm1, %v2177_v32  ;;  %2969 = vmatmul.msk.f32.vlgmr.msra.gmra.mxu0 %vm342_vm2, %v3779_v29 }
 0x15a   : > { %2966 = vmatmul.msk.f32.vlgmr.msrb.gmra.mxu3 %vm342_vm2, %v2948_v17 }
 0x15b   : > { %v866_v35 = vpop.f32.mrf.mxu2 }
 0x15c   : > { %v1029_v39 = vadd.f32 %v866_v35, %v3737_v50 }
 0x15e   : > { %v2425_v40 = vpop.permute.xlu1 %2424  ;;  %v1006_v43 = vpop.f32.mrf.mxu1 }
 0x15f   : > { %v2423_v41 = vpop.permute.xlu0 %2422  ;;  %v2442_v42 = vsel %vm2438_vm9, %v2425_v40, %v2427_v34  ;;  %v1036_v47 = vadd.f32 %v1006_v43, %v746_v63 }
 0x160   : > { %v2440_v45 = vsel %vm2438_vm9, %v2421_v24, %v2423_v41  ;;  %v2441_v46 = vsel %vm2438_vm9, %v2423_v41, %v2425_v40  ;;  %2974 = vmatpush.msk.msra.mxu3 %vm346_vm1, %v2442_v42 }
 0x161   : > { %2970 = vmatpush.msk.msra.mxu1 %vm346_vm1, %v2440_v45  ;;  %2972 = vmatpush.msk.msra.mxu2 %vm346_vm1, %v2441_v46 }
 0x162   : > { %2971 = vmatmul.msk.f32.vlgmr.msra.gmra.mxu1 %vm342_vm2, %v3779_v29  ;;  %2973 = vmatmul.msk.f32.vlgmr.msra.gmra.mxu2 %vm342_vm2, %v3779_v29 }
 0x163   : > { %2975 = vmatmul.msk.f32.vlgmr.msra.gmra.mxu3 %vm342_vm2, %v3779_v29  ;;  %v946_v49 = vpop.f32.mrf.mxu2 }
 0x164   : > { %v1033_v50 = vadd.f32 %v946_v49, %v3749_v53 }
 0x166   : > { %v2431_v16 = vpop.permute.xlu1 %2430 }
 0x167   : > { %v1156_v13 = vpop.f32.mrf.mxu0  ;;  %v2429_v18 = vpop.permute.xlu0 %2428  ;;  %v2445_v14 = vsel %vm2438_vm9, %v2431_v16, %v2433_v36 }
 0x168   : > { %v1300_v37 = vadd.f32 %v1156_v13, %v1030_v12  ;;  %v2443_v51 = vsel %vm2438_vm9, %v2427_v34, %v2429_v18  ;;  %v2444_v17 = vsel %vm2438_vm9, %v2429_v18, %v2431_v16  ;;  %v1176_v19 = vpop.f32.mrf.mxu1  ;;  %2980 = vmatpush.msk.msrb.mxu2 %vm346_vm1, %v2445_v14 }
 0x169   : > { %v1301_v38 = vadd.f32 %v1176_v19, %v1031_v21  ;;  %2976 = vmatpush.msk.msrb.mxu0 %vm346_vm1, %v2443_v51  ;;  %2978 = vmatpush.msk.msrb.mxu1 %vm346_vm1, %v2444_v17 }
 0x16a   : > { %2977 = vmatmul.msk.f32.vlgmr.msrb.gmra.mxu0 %vm342_vm2, %v3779_v29  ;;  %2979 = vmatmul.msk.f32.vlgmr.msrb.gmra.mxu1 %vm342_vm2, %v3779_v29 }
 0x16b   : > { %2981 = vmatmul.msk.f32.vlgmr.msrb.gmra.mxu2 %vm342_vm2, %v3779_v29  ;;  %v1026_v3 = vpop.f32.mrf.mxu2 }
 0x16c   : > { %v1037_v52 = vadd.f32 %v1026_v3, %v3759_v0  ;;  %v1136_v53 = vpop.f32.mrf.mxu3 }
 0x16d   : > { %v1299_v54 = vadd.f32 %v1136_v53, %v1029_v39 }
 0x16e   : > { %v2437_v55 = vpop.permute.xlu1 %2436 }
 0x16f   : > { %v1236_v56 = vpop.f32.mrf.mxu0  ;;  %v2435_v57 = vpop.permute.xlu0 %2434 }
 0x170   : > { %v1304_v58 = vadd.f32 %v1236_v56, %v1034_v31  ;;  %v2446_v59 = vsel %vm2438_vm9, %v2433_v36, %v2435_v57  ;;  %v2447_v2 = vsel %vm2438_vm9, %v2435_v57, %v2437_v55  ;;  %v1256_v1 = vpop.f32.mrf.mxu1 }
 0x171   : > { %v1305_v60 = vadd.f32 %v1256_v1, %v1035_v33  ;;  %2982 = vmatpush.msk.msrb.mxu3 %vm346_vm1, %v2446_v59  ;;  %2984 = vmatpush.msk.msra.mxu0 %vm346_vm1, %v2447_v2 }
 0x172   : > { %2983 = vmatmul.msk.f32.vlgmr.msrb.gmra.mxu3 %vm342_vm2, %v3779_v29  ;;  %2985 = vmatmul.msk.f32.vlgmr.msra.gmra.mxu0 %vm342_vm2, %v3779_v29 }
 0x173   : > { %v1196_v61 = vpop.f32.mrf.mxu2 }
 0x174   : > { %v1302_v62 = vadd.f32 %v1196_v61, %v3770_v23  ;;  %v1216_v63 = vpop.f32.mrf.mxu3 }
 0x175   : > { %v1303_v4 = vadd.f32 %v1216_v63, %v1033_v50 }
 0x177   : > { %v1406_v0 = vpop.f32.mrf.mxu0 }
 0x178   : > { %v1569_v5 = vadd.f32 %v1406_v0, %v1299_v54  ;;  %v1426_v6 = vpop.f32.mrf.mxu1 }
 0x179   : > { %v1570_v7 = vadd.f32 %v1426_v6, %v1300_v37 }
 0x17b   : > { %v1276_v8 = vpop.f32.mrf.mxu2 }
 0x17c   : > { %v1306_v9 = vadd.f32 %v1276_v8, %v1036_v47  ;;  %v1296_v10 = vpop.f32.mrf.mxu3 }
 0x17d   : > { %v1307_v11 = vadd.f32 %v1296_v10, %v1037_v52 }
 0x17f   : > { %v1486_v12 = vpop.f32.mrf.mxu0 }
 0x180   : > { %v1573_v15 = vadd.f32 %v1486_v12, %v1303_v4  ;;  %v1506_v20 = vpop.f32.mrf.mxu1 }
 0x181   : > { %v1574_v21 = vadd.f32 %v1506_v20, %v1304_v58 }
 0x183   : > { %v1446_v24 = vpop.f32.mrf.mxu2 }
 0x184   : > { %v1571_v22 = vadd.f32 %v1446_v24, %v1301_v38  ;;  %v1466_v25 = vpop.f32.mrf.mxu3 }
 0x185   : > { %v1572_v26 = vadd.f32 %v1466_v25, %v1302_v62 }
 0x187   : > { %v1566_v27 = vpop.f32.mrf.mxu0 }
 0x188   : > { %v3826_v23 = vadd.f32 %v1566_v27, %v1307_v11 }
 0x18b   : > { %v1526_v28 = vpop.f32.mrf.mxu2 }
 0x18c   : > { %v3828_v29 = vadd.f32 %v1526_v28, %v1305_v60  ;;  %v1546_v30 = vpop.f32.mrf.mxu3 }
 0x18d   : > { %v1576_v31 = vadd.f32 %v1546_v30, %v1306_v9  ;;  %v1676_v33 = vpop.f32.mrf.mxu1 }
 0x18e   : > { %v1839_v17 = vadd.f32 %v1676_v33, %v1569_v5 }
 0x18f   : > { %v1736_v32 = vpop.f32.mrf.mxu0 }
 0x190   : > { %v1842_v0 = vadd.f32 %v1736_v32, %v1572_v26 }
 0x193   : > { %v1696_v39 = vpop.f32.mrf.mxu2 }
 0x194   : > { %v1840_v57 = vadd.f32 %v1696_v39, %v1570_v7 }
 0x195   : > { %v1716_v40 = vpop.f32.mrf.mxu3 }
 0x196   : > { %v1756_v41 = vpop.f32.mrf.mxu1  ;;  %v3834_v53 = vpop.permute.xlu2 %2661  ;;  %v1841_v63 = vadd.f32 %v1716_v40, %v1571_v22 }
 0x197   : > { %v1843_v5 = vadd.f32 %v1756_v41, %v1573_v15 }
 0x19c   : > { %v1776_v42 = vpop.f32.mrf.mxu2 }
 0x19d   : > { %v1796_v43 = vpop.f32.mrf.mxu3  ;;  %v1844_v6 = vadd.f32 %v1776_v42, %v1574_v21 }
 0x19e   : > { %v1816_v34 = vpop.f32.mrf.mxu0 }
 0x19f   : > { %v3830_v35 = vadd.f32 %v1816_v34, %v1576_v31  ;;  %v1845_v34 = vadd.f32 %v1796_v43, %v3828_v29 }
 0x1a4   : > { %v1946_v46 = vpop.f32.mrf.mxu2 }
 0x1a5   : > { %v1836_v44 = vpop.f32.mrf.mxu1  ;;  %v2109_v38 = vadd.f32 %v1946_v46, %v1839_v17 }
 0x1a6   : > { %v1847_v40 = vadd.f32 %v1836_v44, %v3826_v23 }
 0x1a7   : > { %v1986_v45 = vpop.f32.mrf.mxu0 }
 0x1a8   : > { %v2111_v8 = vadd.f32 %v1986_v45, %v1841_v63 }
 0x1ac   : > { %v1966_v47 = vpop.f32.mrf.mxu3 }
 0x1ad   : > { %v2110_v59 = vadd.f32 %v1966_v47, %v1840_v57 }
 0x1ae   : > { %v2006_v48 = vpop.f32.mrf.mxu1 }
 0x1af   : > { %v2112_v9 = vadd.f32 %v2006_v48, %v1842_v0 }
 0x1b4   : > { %v2026_v50 = vpop.f32.mrf.mxu2 }
 0x1b5   : > { %v2046_v36 = vpop.f32.mrf.mxu3  ;;  %v2113_v10 = vadd.f32 %v2026_v50, %v1843_v5 }
 0x1b6   : > { %v2066_v49 = vpop.f32.mrf.mxu0  ;;  %v2114_v11 = vadd.f32 %v2046_v36, %v1844_v6 }
 0x1b7   : > { %v3832_v16 = vpop.f32.mrf.mxu1  ;;  %v2115_v46 = vadd.f32 %v2066_v49, %v1845_v34 }
 0x1bd   : > { %v2106_v18 = vpop.f32.mrf.mxu2 }
 0x1be   : > { %v2236_v13 = vpop.f32.mrf.mxu0  ;;  %v2117_v48 = vadd.f32 %v2106_v18, %v1847_v40  ;;  %v2116_v18 = vadd.f32 %v3832_v16, %v3830_v35 }
 0x1bf   : > { %v2380_v61 = vadd.f32 %v2236_v13, %v2110_v59 }
 0x1c4   : > { %v2216_v14 = vpop.f32.mrf.mxu3 }
 0x1c5   : > { %v2379_v52 = vadd.f32 %v2216_v14, %v2109_v38 }
 0x1c6   : > { %v2256_v37 = vpop.f32.mrf.mxu1 }
 0x1c7   : > { %v2381_v12 = vadd.f32 %v2256_v37, %v2111_v8 }
 0x1cd   : > { %v2276_v19 = vpop.f32.mrf.mxu2  ;;  %v2296_v3 = vpop.f32.mrf.mxu3 }
 0x1ce   : > { %v2316_v51 = vpop.f32.mrf.mxu0  ;;  %v2382_v24 = vadd.f32 %v2276_v19, %v2112_v9  ;;  %v2383_v27 = vadd.f32 %v2296_v3, %v2113_v10 }
 0x1cf   : > { %v2336_v54 = vpop.f32.mrf.mxu1  ;;  %v2384_v28 = vadd.f32 %v2316_v51, %v2114_v11 }
 0x1d0   : > { %v2385_v13 = vadd.f32 %v2336_v54, %v2115_v46 }
 0x1d5   : > { %v2356_v1 = vpop.f32.mrf.mxu2 }
 0x1d6   : > { %v2486_v55 = vpop.f32.mrf.mxu0  ;;  %v2386_v17 = vadd.f32 %v2356_v1, %v2116_v18 }
 0x1d7   : > { %v2649_v56 = vadd.f32 %v2486_v55, %v2379_v52 }
 0x1d9   : > { %v2664_v58 = vadd.f32 %v3834_v53, %v2649_v56 }
 0x1db   : > { %v2673_v2 = vmax.f32 %v2664_v58, 0.0 }
 0x1dd   : > { %v2376_v60 = vpop.f32.mrf.mxu3  ;;  %2682 = vst [vmem:[%s3838_s7] sm:$0xff] %v2673_v2 }
 0x1de   : > { %v2387_v29 = vadd.f32 %v2376_v60, %v2117_v48 }
 0x1df   : > { %v2506_v62 = vpop.f32.mrf.mxu1 }
 0x1e0   : > { %v2650_v4 = vadd.f32 %v2506_v62, %v2380_v61 }
 0x1e2   : > { %v2665_v7 = vadd.f32 %v3834_v53, %v2650_v4 }
 0x1e4   : > { %v2674_v20 = vmax.f32 %v2665_v7, 0.0 }
 0x1e5   : > { %v2526_v25 = vpop.f32.mrf.mxu2 }
 0x1e6   : > { %2683 = vst [vmem:[%s3838_s7 + $0x8] sm:$0xff] %v2674_v20  ;;  %v2651_v30 = vadd.f32 %v2526_v25, %v2381_v12  ;;  %v2546_v22 = vpop.f32.mrf.mxu3 }
 0x1e7   : > { %v2652_v31 = vadd.f32 %v2546_v22, %v2382_v24  ;;  %v2566_v26 = vpop.f32.mrf.mxu0  ;;  %v2586_v15 = vpop.f32.mrf.mxu1 }
 0x1e8   : > { %v2666_v21 = vadd.f32 %v3834_v53, %v2651_v30  ;;  %v2653_v32 = vadd.f32 %v2566_v26, %v2383_v27  ;;  %v2654_v33 = vadd.f32 %v2586_v15, %v2384_v28 }
 0x1e9   : > { %v2667_v39 = vadd.f32 %v3834_v53, %v2652_v31 }
 0x1ea   : > { %v2675_v41 = vmax.f32 %v2666_v21, 0.0  ;;  %v2668_v42 = vadd.f32 %v3834_v53, %v2653_v32  ;;  %v2669_v45 = vadd.f32 %v3834_v53, %v2654_v33 }
 0x1eb   : > { %v2676_v47 = vmax.f32 %v2667_v39, 0.0 }
 0x1ec   : > { %2684 = vst [vmem:[%s3838_s7 + $0x10] sm:$0xff] %v2675_v41  ;;  %v2677_v50 = vmax.f32 %v2668_v42, 0.0  ;;  %v2678_v36 = vmax.f32 %v2669_v45, 0.0 }
 0x1ed   : > { %2685 = vst [vmem:[%s3838_s7 + $0x18] sm:$0xff] %v2676_v47 }
 0x1ee   : > { %2686 = vst [vmem:[%s3838_s7 + $0x20] sm:$0xff] %v2677_v50  ;;  %v2606_v43 = vpop.f32.mrf.mxu2 }
 0x1ef   : > { %2687 = vst [vmem:[%s3838_s7 + $0x28] sm:$0xff] %v2678_v36  ;;  %v2655_v23 = vadd.f32 %v2606_v43, %v2385_v13  ;;  %v2646_v44 = vpop.f32.mrf.mxu0 }
 0x1f0   : > { %v2657_v14 = vadd.f32 %v2646_v44, %v2387_v29 }
 0x1f1   : > { %v2670_v49 = vadd.f32 %v3834_v53, %v2655_v23 }
 0x1f2   : > { %v2672_v37 = vadd.f32 %v3834_v53, %v2657_v14 }
 0x1f3   : > { %v2679_v51 = vmax.f32 %v2670_v49, 0.0 }
 0x1f4   : > { %v2681_v19 = vmax.f32 %v2672_v37, 0.0 }
 0x1f5   : > { %2688 = vst [vmem:[%s3838_s7 + $0x30] sm:$0xff] %v2679_v51  ;;  %v2626_v38 = vpop.f32.mrf.mxu3 }
 0x1f6   : > { %2690 = vst [vmem:[%s3838_s7 + $0x40] sm:$0xff] %v2681_v19  ;;  %v2656_v3 = vadd.f32 %v2626_v38, %v2386_v17 }
 0x1f8   : > { %v2671_v35 = vadd.f32 %v3834_v53, %v2656_v3 }
 0x1fa   : > { %v2680_v16 = vmax.f32 %v2671_v35, 0.0 }
 0x1fc   : > { %2689 = vst [vmem:[%s3838_s7 + $0x38] sm:$0xff] %v2680_v16 }
 0x1fd   : > { %3124 = shalt.err (!%p3121_p0)
}
 0x1fe   : > { %2996 = dma.vmem_to_hbm [thread:$0]  (%p3266_p9), %s2708_s18, 1152, %s2710_s12, %s2692_s13  }
 0x1ff PF: > { %s2721_s21 = sand.u32 1, %s3159_s15   ;;  %p3003_p2 = pnand %p2812_p12, %p3273_p11 }
 0x200   : > { %s2722_s6 = scalar_lea.sflag [#allocation5], %s2721_s21 }
 0x201   : > { %p3004_p1 = pneg %p3003_p2 }
 0x203   : > { %3154 = dma.done.wait (%p3004_p1), %s2722_s6, 1152  }
 0x204   : > { %3156 = vsyncadd (%p3004_p1), %s2722_s6, 4294966144  ;;  %s20_s20 = sadd.s32 1, %s3179_s20   ;;  %s3909_s15 = smov %s3163_s16 }
 0x205   : > { %p17_p3 = scmp.ge.s32.totalorder %s20_s20, 4   ;;  %s3910_s16 = smov %s3167_s17 }
 0x206   : > { %s3911_s17 = smov %s3271_s29  ;;  %s3912_s18 = smov %s3175_s19 }
 0x207   : > { %s3913_s19 = smov %s3915_s23  ;;  %19 = sbr.rel (!%p17_p3) target bundleno = 6 (0x6), region = 119 }
 0x20c   :  { %2728 = vsyncpa [#allocation4], 1 }
 0x20d   :  { %2730 = vsyncpa [#allocation4 + $0x1], 1 }
 0x20e   :  { %2731 = vsyncpa [#allocation5], 1 }
 0x20f   :  { %2733 = vsyncpa [#allocation5 + $0x1], 1 }

</bundles_post_ra>
